<compile_context>
chip_gen: v5e
topology: v5e:2x2
jax: 0.10.0
libtpu: 0.0.40
codegen_flags: <defaults>
</compile_context>

<pallas_src>
import math
import functools

import numpy as np
import jax
import jax.numpy as jnp
from jax.experimental import pallas as pl
from jax.experimental.pallas import tpu as pltpu


def _layernorm(x, gamma, beta, eps):
    mean = jnp.mean(x, axis=-1, keepdims=True)
    var = jnp.mean((x - mean) ** 2, axis=-1, keepdims=True)
    return (x - mean) * jax.lax.rsqrt(var + eps) * gamma + beta


def encoder_layer_kernel(
    x_ref, mask_ref,
    wqkv_ref, bqkv_ref,
    wo_ref, bo_ref,
    ln1_g_ref, ln1_b_ref,
    w1_ref, b1_ref, w2_ref, b2_ref,
    ln2_g_ref, ln2_b_ref,
    o_ref,
    *, num_heads, ln_eps, compute_dtype,
):
    T, S, E = x_ref.shape          # block: (TILE_B, S, E)
    H = num_heads
    hd = E // H
    R = T * S
    cd = compute_dtype

    def mm(a, w):                  # weights already in compute_dtype (wrapper-cast)
        return jnp.dot(a.astype(cd), w, preferred_element_type=jnp.float32)

    x2d = x_ref[...].reshape(R, E)            # collapse (T, S) -> fill MXU M dim

    # ---- fused QKV projection: one lane-dense (R,E)@(E,3E) matmul -------------
    # 1/sqrt(hd) query scale is pre-folded into wqkv/bqkv columns [0:E].
    qkv = mm(x2d, wqkv_ref[...]) + bqkv_ref[...]          # (R, 3E), f32

    # mask broadcast hoisted out of the head loop (one materialization per step)
    mask_b = jnp.broadcast_to(mask_ref[...][None], (T, S, S))

    # ---- multi-head self-attention (heads batched over the T sequences) -------
    # TODO(synk): for H >= 8 switch to lax.fori_loop(..., unroll=True) with a VMEM
    # scratch to bound vreg live ranges; H=2 here, so a static unroll is fine.
    # TODO(synk): for long sequences (S >= ~1-2K) tile K/V over S with an online
    # softmax (flash-style) inner loop instead of materializing (T,S,S) probs.
    head_outs = []
    for h in range(H):
        qh = qkv[:, h * hd:(h + 1) * hd].reshape(T, S, hd)
        kh = qkv[:, E + h * hd:E + (h + 1) * hd].reshape(T, S, hd)
        vh = qkv[:, 2 * E + h * hd:2 * E + (h + 1) * hd].reshape(T, S, hd)

        # scores: batched over T, contraction on hd (no kh.T materialized)
        s = jnp.einsum("tqd,tkd->tqk", qh.astype(cd), kh.astype(cd),
                       preferred_element_type=jnp.float32) + mask_b
        s = s - jnp.max(s, axis=-1, keepdims=True)
        p = jnp.exp(s)                                            # f32 softmax math
        inv_l = pl.reciprocal(jnp.sum(p, axis=-1, keepdims=True), approx=True)
        oh = jnp.einsum("tqk,tkd->tqd", p.astype(cd), vh.astype(cd),
                        preferred_element_type=jnp.float32) * inv_l   # (T, S, hd)
        head_outs.append(oh)

    # head concat (lane dim) + single full-depth (K=E) out-projection
    att = jnp.concatenate(head_outs, axis=-1).reshape(R, E)
    att_out = mm(att, wo_ref[...]) + bo_ref[...]
    # drop1: identity (inference / eval mode)

    out1 = _layernorm(x2d + att_out, ln1_g_ref[...], ln1_b_ref[...], ln_eps)

    # ---- position-wise FFN -----------------------------------------------------
    # TODO(synk): at production sizes (E>=1024, d_ff>=4096) on v7x, tile the FFN
    # over d_ff with an extra "arbitrary" grid axis instead of holding W1/W2 resident.
    h1 = jnp.maximum(mm(out1, w1_ref[...]) + b1_ref[...], 0.0)
    ffn = mm(h1, w2_ref[...]) + b2_ref[...]
    # FFN-internal dropout + drop2: identity (inference / eval mode)

    y = _layernorm(out1 + ffn, ln2_g_ref[...], ln2_b_ref[...], ln_eps)
    o_ref[...] = y.reshape(T, S, E).astype(o_ref.dtype)


def prepare_kernel_params(p, num_heads, compute_dtype=jnp.float32):
    """Pre-transpose / pre-fuse the PyTorch-layout parameters host-side so the
    kernel never transposes or casts weights on-chip.  Matmul weights are stored
    in compute_dtype (e.g. bf16 on v6e/v7x); biases/LN params stay f32 because
    they are applied to f32 accumulations."""
    E = p["out_w"].shape[0]
    hd = E // num_heads
    scale = 1.0 / math.sqrt(hd)
    cd = compute_dtype

    wqkv = p["in_w"].T.astype(jnp.float32)                 # (E, 3E), x @ W layout
    bqkv = p["in_b"].reshape(1, 3 * E).astype(jnp.float32)
    # fold the 1/sqrt(hd) query scale into the q columns (one-time host-side fold)
    q_scale = jnp.concatenate([jnp.full((E,), scale, jnp.float32),
                               jnp.ones((2 * E,), jnp.float32)])
    wqkv = wqkv * q_scale[None, :]
    bqkv = bqkv * q_scale[None, :]

    return {
        "wqkv": wqkv.astype(cd), "bqkv": bqkv,
        "wo": p["out_w"].T.astype(cd), "bo": p["out_b"],   # (E, E), (1, E)
        "ln1_g": p["ln1_g"], "ln1_b": p["ln1_b"],
        "w1": p["w1"].T.astype(cd), "b1": p["w1_b"],       # (E, D_HID), (1, D_HID)
        "w2": p["w2"].T.astype(cd), "b2": p["w2_b"],       # (D_HID, E), (1, E)
        "ln2_g": p["ln2_g"], "ln2_b": p["ln2_b"],
    }


def _pick_tile_b(B, S, target_rows=512, min_rows=128):
    # Fill the MXU M dimension (target 256-512 rows per grid step for the
    # 256-wide v6e/v7x MXU) while keeping tile_b an exact divisor of B.
    tile_b = max(1, min(B, max(1, target_rows // max(S, 1))))
    while B % tile_b:
        tile_b -= 1
    # v7x has 2 TensorCores sharing the parallel grid axis: prefer an even grid
    # length when we can do so without dropping below ~min_rows rows per step.
    while (B // tile_b) % 2 == 1 and tile_b % 2 == 0 and (tile_b // 2) * S >= min_rows:
        tile_b //= 2
    return tile_b


def _vmem_limit_bytes(default=56 * 2 ** 20):
    # Physical VMEM minus ~1/8 headroom: ~112 MiB on v5e/v6e (128 MiB), ~56 MiB on
    # v7x (64 MiB).  Falls back to a conservative 56 MiB if the query is unavailable.
    try:
        cap = int(getattr(pltpu.get_tpu_info(), "vmem_capacity_bytes", 0))
    except Exception:
        cap = 0
    if cap <= 0:
        return default
    return max(default, cap - max(cap // 8, 8 * 2 ** 20))


def transformer_encoder_layer(x, src_mask, kparams, num_heads=2,
                              ln_eps=1e-6, compute_dtype=jnp.float32,
                              tile_b=None, single_buffer_consts=True):
    B, S, E = x.shape
    if tile_b is None:
        tile_b = _pick_tile_b(B, S)
    assert B % tile_b == 0

    ordered = [
        kparams["wqkv"], kparams["bqkv"],
        kparams["wo"], kparams["bo"],
        kparams["ln1_g"], kparams["ln1_b"],
        kparams["w1"], kparams["b1"], kparams["w2"], kparams["b2"],
        kparams["ln2_g"], kparams["ln2_b"],
    ]

    kernel = functools.partial(
        encoder_layer_kernel,
        num_heads=num_heads, ln_eps=ln_eps, compute_dtype=compute_dtype)

    def _const_spec(arr, single_buf):
        # Constant operand: same block every grid step.  Single-buffer it so it
        # is not double-allocated in VMEM (matters at production sizes on v7x).
        n = arr.ndim
        kwargs = {"pipeline_mode": pl.Buffered(1)} if single_buf else {}
        return pl.BlockSpec(arr.shape, lambda b, _n=n: (0,) * _n, **kwargs)

    def build(single_buf):
        in_specs = [
            pl.BlockSpec((tile_b, S, E), lambda b: (b, 0, 0)),   # x, batch-tiled
            _const_spec(src_mask, single_buf),                   # (S, S) additive mask
        ] + [_const_spec(a, single_buf) for a in ordered]

        # NOTE: keep E a multiple of 128 at production sizes so output stores and
        # the head concat are lane-dense (largest single store-phase lever).
        return pl.pallas_call(
            kernel,
            out_shape=jax.ShapeDtypeStruct((B, S, E), x.dtype),
            grid_spec=pltpu.PrefetchScalarGridSpec(
                num_scalar_prefetch=0,
                grid=(B // tile_b,),
                in_specs=in_specs,
                out_specs=pl.BlockSpec((tile_b, S, E), lambda b: (b, 0, 0)),
            ),
            compiler_params=pltpu.CompilerParams(
                dimension_semantics=("parallel",),
                vmem_limit_bytes=_vmem_limit_bytes(),
            ),
        )

    if single_buffer_consts:
        try:
            out = build(True)(x, src_mask, *ordered)
            return jax.block_until_ready(out)
        except Exception:
            # pipeline_mode=pl.Buffered(1) unsupported in this build: fall back to
            # default (double-buffered) constant specs - semantics are identical.
            pass
    return build(False)(x, src_mask, *ordered)


# ---------- pure-JAX reference (for correctness check), PyTorch layout ----------
def reference_forward(x, src_mask, params, num_heads=2):
    B, S, E = x.shape
    hd = E // num_heads
    scale = 1.0 / math.sqrt(hd)

    qkv = x @ params["in_w"].T + params["in_b"][0]            # (B, S, 3E)
    q, k, v = qkv[..., :E], qkv[..., E:2 * E], qkv[..., 2 * E:]

    def split_heads(t):                                        # (B, H, S, hd)
        return t.reshape(B, S, num_heads, hd).transpose(0, 2, 1, 3)

    q, k, v = split_heads(q) * scale, split_heads(k), split_heads(v)
    s = jnp.einsum("bhqd,bhkd->bhqk", q, k) + src_mask[None, None]
    p = jax.nn.softmax(s, axis=-1)
    o = jnp.einsum("bhqk,bhkd->bhqd", p, v).transpose(0, 2, 1, 3).reshape(B, S, E)
    att_out = o @ params["out_w"].T + params["out_b"][0]

    def ln(t, g, b):
        m = jnp.mean(t, axis=-1, keepdims=True)
        var = jnp.mean((t - m) ** 2, axis=-1, keepdims=True)
        return (t - m) * jax.lax.rsqrt(var + 1e-6) * g[0] + b[0]

    out1 = ln(x + att_out, params["ln1_g"], params["ln1_b"])
    h1 = jax.nn.relu(out1 @ params["w1"].T + params["w1_b"][0])
    ffn = h1 @ params["w2"].T + params["w2_b"][0]
    return ln(out1 + ffn, params["ln2_g"], params["ln2_b"])


if __name__ == "__main__":
    B, S, E, H = 2, 8, 32, 2
    D_HID = 256

    key = jax.random.PRNGKey(0)
    keys = jax.random.split(key, 12)

    torch_params = {
        "in_w":  0.1 * jax.random.normal(keys[0], (3 * E, E), jnp.float32),
        "in_b":  0.1 * jax.random.normal(keys[1], (1, 3 * E), jnp.float32),
        "out_w": 0.1 * jax.random.normal(keys[2], (E, E), jnp.float32),
        "out_b": 0.1 * jax.random.normal(keys[3], (1, E), jnp.float32),
        "ln1_g": jnp.ones((1, E), jnp.float32),
        "ln1_b": jnp.zeros((1, E), jnp.float32),
        "w1":    0.1 * jax.random.normal(keys[4], (D_HID, E), jnp.float32),
        "w1_b":  0.1 * jax.random.normal(keys[5], (1, D_HID), jnp.float32),
        "w2":    0.1 * jax.random.normal(keys[6], (E, D_HID), jnp.float32),
        "w2_b":  0.1 * jax.random.normal(keys[7], (1, E), jnp.float32),
        "ln2_g": jnp.ones((1, E), jnp.float32),
        "ln2_b": jnp.zeros((1, E), jnp.float32),
    }

    x = jax.random.normal(keys[8], (B, S, E), jnp.float32)
    # additive float attn mask (lower-triangular allowed, rest heavily masked)
    tri = jnp.tril(jnp.ones((S, S), jnp.bool_))
    src_mask = jnp.where(tri, 0.0, -1e9).astype(jnp.float32)

    # f32 compute here for a tight correctness check; pass compute_dtype=jnp.bfloat16
    # to prepare_kernel_params/transformer_encoder_layer on v6e/v7x for ~2x MXU rate.
    kparams = prepare_kernel_params(torch_params, H, compute_dtype=jnp.float32)

    out = transformer_encoder_layer(x, src_mask, kparams, num_heads=H)
    out = jax.block_until_ready(out)

    ref = reference_forward(x, src_mask, torch_params, num_heads=H)
    # tolerance covers the EUP approximate-reciprocal softmax normalization
    np.testing.assert_allclose(np.asarray(out), np.asarray(ref),
                               atol=2e-3, rtol=2e-3)

    # TODO(synk): dropout layers are inference-mode identities (no RNG dropout in-kernel).
    print("KERNEL_OK")
</pallas_src>

<mosaic_0001>
module attributes {stable_mosaic.version = 11 : i64} {
  func.func @encoder_layer_kernel(%arg0: i32, %arg1: memref<2x8x32xf32, #tpu.memory_space<vmem>>, %arg2: memref<8x8xf32, #tpu.memory_space<vmem>>, %arg3: memref<32x96xf32, #tpu.memory_space<vmem>>, %arg4: memref<1x96xf32, #tpu.memory_space<vmem>>, %arg5: memref<32x32xf32, #tpu.memory_space<vmem>>, %arg6: memref<1x32xf32, #tpu.memory_space<vmem>>, %arg7: memref<1x32xf32, #tpu.memory_space<vmem>>, %arg8: memref<1x32xf32, #tpu.memory_space<vmem>>, %arg9: memref<32x256xf32, #tpu.memory_space<vmem>>, %arg10: memref<1x256xf32, #tpu.memory_space<vmem>>, %arg11: memref<256x32xf32, #tpu.memory_space<vmem>>, %arg12: memref<1x32xf32, #tpu.memory_space<vmem>>, %arg13: memref<1x32xf32, #tpu.memory_space<vmem>>, %arg14: memref<1x32xf32, #tpu.memory_space<vmem>>, %arg15: memref<2x8x32xf32, #tpu.memory_space<vmem>>) attributes {dimension_semantics = [#tpu.dimension_semantics<parallel>], iteration_bounds = array<i64: 1>, scalar_prefetch = 0 : i64, scratch_operands = 0 : i64, tpu.core_type = #tpu.core_type<tc>, window_params = [{transform_indices = @transform_0, window_bounds = array<i64: 2, 8, 32>}, {pipeline_mode = #tpu.pipeline_mode<synchronous>, transform_indices = @transform_1, window_bounds = array<i64: 8, 8>}, {pipeline_mode = #tpu.pipeline_mode<synchronous>, transform_indices = @transform_2, window_bounds = array<i64: 32, 96>}, {pipeline_mode = #tpu.pipeline_mode<synchronous>, transform_indices = @transform_3, window_bounds = array<i64: 1, 96>}, {pipeline_mode = #tpu.pipeline_mode<synchronous>, transform_indices = @transform_4, window_bounds = array<i64: 32, 32>}, {pipeline_mode = #tpu.pipeline_mode<synchronous>, transform_indices = @transform_5, window_bounds = array<i64: 1, 32>}, {pipeline_mode = #tpu.pipeline_mode<synchronous>, transform_indices = @transform_6, window_bounds = array<i64: 1, 32>}, {pipeline_mode = #tpu.pipeline_mode<synchronous>, transform_indices = @transform_7, window_bounds = array<i64: 1, 32>}, {pipeline_mode = #tpu.pipeline_mode<synchronous>, transform_indices = @transform_8, window_bounds = array<i64: 32, 256>}, {pipeline_mode = #tpu.pipeline_mode<synchronous>, transform_indices = @transform_9, window_bounds = array<i64: 1, 256>}, {pipeline_mode = #tpu.pipeline_mode<synchronous>, transform_indices = @transform_10, window_bounds = array<i64: 256, 32>}, {pipeline_mode = #tpu.pipeline_mode<synchronous>, transform_indices = @transform_11, window_bounds = array<i64: 1, 32>}, {pipeline_mode = #tpu.pipeline_mode<synchronous>, transform_indices = @transform_12, window_bounds = array<i64: 1, 32>}, {pipeline_mode = #tpu.pipeline_mode<synchronous>, transform_indices = @transform_13, window_bounds = array<i64: 1, 32>}, {transform_indices = @transform_14, window_bounds = array<i64: 2, 8, 32>}]} {
    %c0 = arith.constant 0 : index
    %c0_0 = arith.constant 0 : index
    %c0_1 = arith.constant 0 : index
    %0 = vector.load %arg1[%c0, %c0_0, %c0_1] : memref<2x8x32xf32, #tpu.memory_space<vmem>>, vector<2x8x32xf32>
    %1 = vector.shape_cast %0 : vector<2x8x32xf32> to vector<16x32xf32>
    %c0_2 = arith.constant 0 : index
    %c0_3 = arith.constant 0 : index
    %2 = vector.load %arg3[%c0_2, %c0_3] : memref<32x96xf32, #tpu.memory_space<vmem>>, vector<32x96xf32>
    %cst = arith.constant dense<0.000000e+00> : vector<16x96xf32>
    %3 = tpu.matmul %1, %2, %cst {dimension_numbers = #tpu.dot_dimension_numbers<[1], [0], [0], [1], [0, 0, 1, 1], [], []>} : vector<16x32xf32>, vector<32x96xf32>, vector<16x96xf32> -> vector<16x96xf32>
    %c0_4 = arith.constant 0 : index
    %c0_5 = arith.constant 0 : index
    %4 = vector.load %arg4[%c0_4, %c0_5] : memref<1x96xf32, #tpu.memory_space<vmem>>, vector<1x96xf32>
    %5 = vector.broadcast %4 : vector<1x96xf32> to vector<16x96xf32>
    %6 = arith.addf %3, %5 : vector<16x96xf32>
    %c0_6 = arith.constant 0 : index
    %c0_7 = arith.constant 0 : index
    %7 = vector.load %arg2[%c0_6, %c0_7] : memref<8x8xf32, #tpu.memory_space<vmem>>, vector<8x8xf32>
    %8 = vector.shape_cast %7 : vector<8x8xf32> to vector<1x8x8xf32>
    %9 = vector.shape_cast %8 : vector<1x8x8xf32> to vector<1x8x8xf32>
    %10 = vector.broadcast %9 : vector<1x8x8xf32> to vector<2x8x8xf32>
    %11 = vector.extract_strided_slice %6 {offsets = [0, 0], sizes = [16, 16], strides = [1, 1]} : vector<16x96xf32> to vector<16x16xf32>
    %12 = vector.shape_cast %11 : vector<16x16xf32> to vector<2x8x16xf32>
    %13 = vector.extract_strided_slice %6 {offsets = [0, 32], sizes = [16, 16], strides = [1, 1]} : vector<16x96xf32> to vector<16x16xf32>
    %14 = vector.shape_cast %13 : vector<16x16xf32> to vector<2x8x16xf32>
    %15 = vector.extract_strided_slice %6 {offsets = [0, 64], sizes = [16, 16], strides = [1, 1]} : vector<16x96xf32> to vector<16x16xf32>
    %16 = vector.shape_cast %15 : vector<16x16xf32> to vector<2x8x16xf32>
    "tpu.trace_start"() <{level = 10 : i32, message = "tqd,tkd->tqk"}> : () -> ()
    %cst_8 = arith.constant dense<0.000000e+00> : vector<2x8x8xf32>
    %17 = tpu.matmul %12, %14, %cst_8 {dimension_numbers = #tpu.dot_dimension_numbers<[2], [2], [1], [1], [0, 0, 0, 1, 1, 1], [0], [0]>} : vector<2x8x16xf32>, vector<2x8x16xf32>, vector<2x8x8xf32> -> vector<2x8x8xf32>
    "tpu.trace_stop"() : () -> ()
    %18 = arith.addf %17, %10 : vector<2x8x8xf32>
    %cst_9 = arith.constant dense<0xFF800000> : vector<2x8xf32>
    %19 = vector.multi_reduction <maximumf>, %18, %cst_9 [2] : vector<2x8x8xf32> to vector<2x8xf32>
    %20 = vector.shape_cast %19 : vector<2x8xf32> to vector<2x8x1xf32>
    %21 = vector.broadcast %20 : vector<2x8x1xf32> to vector<2x8x8xf32>
    %22 = arith.subf %18, %21 : vector<2x8x8xf32>
    %23 = math.exp %22 : vector<2x8x8xf32>
    %cst_10 = arith.constant dense<0.000000e+00> : vector<2x8xf32>
    %24 = vector.multi_reduction <add>, %23, %cst_10 [2] : vector<2x8x8xf32> to vector<2x8xf32>
    %25 = vector.shape_cast %24 : vector<2x8xf32> to vector<2x8x1xf32>
    %26 = tpu.reciprocal %25 {approx = true} : vector<2x8x1xf32> -> vector<2x8x1xf32>
    "tpu.trace_start"() <{level = 10 : i32, message = "tqk,tkd->tqd"}> : () -> ()
    %cst_11 = arith.constant dense<0.000000e+00> : vector<2x8x16xf32>
    %27 = tpu.matmul %23, %16, %cst_11 {dimension_numbers = #tpu.dot_dimension_numbers<[2], [1], [1], [2], [0, 0, 0, 1, 1, 2], [0], [0]>} : vector<2x8x8xf32>, vector<2x8x16xf32>, vector<2x8x16xf32> -> vector<2x8x16xf32>
    "tpu.trace_stop"() : () -> ()
    %28 = vector.broadcast %26 : vector<2x8x1xf32> to vector<2x8x16xf32>
    %29 = arith.mulf %27, %28 : vector<2x8x16xf32>
    %30 = vector.extract_strided_slice %6 {offsets = [0, 16], sizes = [16, 16], strides = [1, 1]} : vector<16x96xf32> to vector<16x16xf32>
    %31 = vector.shape_cast %30 : vector<16x16xf32> to vector<2x8x16xf32>
    %32 = vector.extract_strided_slice %6 {offsets = [0, 48], sizes = [16, 16], strides = [1, 1]} : vector<16x96xf32> to vector<16x16xf32>
    %33 = vector.shape_cast %32 : vector<16x16xf32> to vector<2x8x16xf32>
    %34 = vector.extract_strided_slice %6 {offsets = [0, 80], sizes = [16, 16], strides = [1, 1]} : vector<16x96xf32> to vector<16x16xf32>
    %35 = vector.shape_cast %34 : vector<16x16xf32> to vector<2x8x16xf32>
    "tpu.trace_start"() <{level = 10 : i32, message = "tqd,tkd->tqk"}> : () -> ()
    %cst_12 = arith.constant dense<0.000000e+00> : vector<2x8x8xf32>
    %36 = tpu.matmul %31, %33, %cst_12 {dimension_numbers = #tpu.dot_dimension_numbers<[2], [2], [1], [1], [0, 0, 0, 1, 1, 1], [0], [0]>} : vector<2x8x16xf32>, vector<2x8x16xf32>, vector<2x8x8xf32> -> vector<2x8x8xf32>
    "tpu.trace_stop"() : () -> ()
    %37 = arith.addf %36, %10 : vector<2x8x8xf32>
    %cst_13 = arith.constant dense<0xFF800000> : vector<2x8xf32>
    %38 = vector.multi_reduction <maximumf>, %37, %cst_13 [2] : vector<2x8x8xf32> to vector<2x8xf32>
    %39 = vector.shape_cast %38 : vector<2x8xf32> to vector<2x8x1xf32>
    %40 = vector.broadcast %39 : vector<2x8x1xf32> to vector<2x8x8xf32>
    %41 = arith.subf %37, %40 : vector<2x8x8xf32>
    %42 = math.exp %41 : vector<2x8x8xf32>
    %cst_14 = arith.constant dense<0.000000e+00> : vector<2x8xf32>
    %43 = vector.multi_reduction <add>, %42, %cst_14 [2] : vector<2x8x8xf32> to vector<2x8xf32>
    %44 = vector.shape_cast %43 : vector<2x8xf32> to vector<2x8x1xf32>
    %45 = tpu.reciprocal %44 {approx = true} : vector<2x8x1xf32> -> vector<2x8x1xf32>
    "tpu.trace_start"() <{level = 10 : i32, message = "tqk,tkd->tqd"}> : () -> ()
    %cst_15 = arith.constant dense<0.000000e+00> : vector<2x8x16xf32>
    %46 = tpu.matmul %42, %35, %cst_15 {dimension_numbers = #tpu.dot_dimension_numbers<[2], [1], [1], [2], [0, 0, 0, 1, 1, 2], [0], [0]>} : vector<2x8x8xf32>, vector<2x8x16xf32>, vector<2x8x16xf32> -> vector<2x8x16xf32>
    "tpu.trace_stop"() : () -> ()
    %47 = vector.broadcast %45 : vector<2x8x1xf32> to vector<2x8x16xf32>
    %48 = arith.mulf %46, %47 : vector<2x8x16xf32>
    %49 = tpu.concatenate %29, %48 in 2 : vector<2x8x16xf32>, vector<2x8x16xf32> -> vector<2x8x32xf32>
    %50 = vector.shape_cast %49 : vector<2x8x32xf32> to vector<16x32xf32>
    %c0_16 = arith.constant 0 : index
    %c0_17 = arith.constant 0 : index
    %51 = vector.load %arg5[%c0_16, %c0_17] : memref<32x32xf32, #tpu.memory_space<vmem>>, vector<32x32xf32>
    %cst_18 = arith.constant dense<0.000000e+00> : vector<16x32xf32>
    %52 = tpu.matmul %50, %51, %cst_18 {dimension_numbers = #tpu.dot_dimension_numbers<[1], [0], [0], [1], [0, 0, 1, 1], [], []>} : vector<16x32xf32>, vector<32x32xf32>, vector<16x32xf32> -> vector<16x32xf32>
    %c0_19 = arith.constant 0 : index
    %c0_20 = arith.constant 0 : index
    %53 = vector.load %arg6[%c0_19, %c0_20] : memref<1x32xf32, #tpu.memory_space<vmem>>, vector<1x32xf32>
    %54 = vector.broadcast %53 : vector<1x32xf32> to vector<16x32xf32>
    %55 = arith.addf %52, %54 : vector<16x32xf32>
    %56 = arith.addf %1, %55 : vector<16x32xf32>
    %c0_21 = arith.constant 0 : index
    %c0_22 = arith.constant 0 : index
    %57 = vector.load %arg7[%c0_21, %c0_22] : memref<1x32xf32, #tpu.memory_space<vmem>>, vector<1x32xf32>
    %c0_23 = arith.constant 0 : index
    %c0_24 = arith.constant 0 : index
    %58 = vector.load %arg8[%c0_23, %c0_24] : memref<1x32xf32, #tpu.memory_space<vmem>>, vector<1x32xf32>
    %cst_25 = arith.constant dense<0.000000e+00> : vector<16xf32>
    %59 = vector.multi_reduction <add>, %56, %cst_25 [1] : vector<16x32xf32> to vector<16xf32>
    %60 = vector.shape_cast %59 : vector<16xf32> to vector<16x1xf32>
    %cst_26 = arith.constant 3.200000e+01 : f32
    %61 = vector.broadcast %cst_26 : f32 to vector<16x1xf32>
    %62 = arith.divf %60, %61 : vector<16x1xf32>
    %63 = vector.broadcast %62 : vector<16x1xf32> to vector<16x32xf32>
    %64 = arith.subf %56, %63 : vector<16x32xf32>
    %65 = arith.mulf %64, %64 : vector<16x32xf32>
    %cst_27 = arith.constant dense<0.000000e+00> : vector<16xf32>
    %66 = vector.multi_reduction <add>, %65, %cst_27 [1] : vector<16x32xf32> to vector<16xf32>
    %67 = vector.shape_cast %66 : vector<16xf32> to vector<16x1xf32>
    %cst_28 = arith.constant 3.200000e+01 : f32
    %68 = vector.broadcast %cst_28 : f32 to vector<16x1xf32>
    %69 = arith.divf %67, %68 : vector<16x1xf32>
    %70 = vector.broadcast %62 : vector<16x1xf32> to vector<16x32xf32>
    %71 = arith.subf %56, %70 : vector<16x32xf32>
    %cst_29 = arith.constant 9.99999997E-7 : f32
    %72 = vector.broadcast %cst_29 : f32 to vector<16x1xf32>
    %73 = arith.addf %69, %72 : vector<16x1xf32>
    %74 = math.rsqrt %73 : vector<16x1xf32>
    %75 = vector.broadcast %74 : vector<16x1xf32> to vector<16x32xf32>
    %76 = arith.mulf %71, %75 : vector<16x32xf32>
    %77 = vector.broadcast %57 : vector<1x32xf32> to vector<16x32xf32>
    %78 = arith.mulf %76, %77 : vector<16x32xf32>
    %79 = vector.broadcast %58 : vector<1x32xf32> to vector<16x32xf32>
    %80 = arith.addf %78, %79 : vector<16x32xf32>
    %c0_30 = arith.constant 0 : index
    %c0_31 = arith.constant 0 : index
    %81 = vector.load %arg9[%c0_30, %c0_31] : memref<32x256xf32, #tpu.memory_space<vmem>>, vector<32x256xf32>
    %cst_32 = arith.constant dense<0.000000e+00> : vector<16x256xf32>
    %82 = tpu.matmul %80, %81, %cst_32 {dimension_numbers = #tpu.dot_dimension_numbers<[1], [0], [0], [1], [0, 0, 1, 1], [], []>} : vector<16x32xf32>, vector<32x256xf32>, vector<16x256xf32> -> vector<16x256xf32>
    %c0_33 = arith.constant 0 : index
    %c0_34 = arith.constant 0 : index
    %83 = vector.load %arg10[%c0_33, %c0_34] : memref<1x256xf32, #tpu.memory_space<vmem>>, vector<1x256xf32>
    %84 = vector.broadcast %83 : vector<1x256xf32> to vector<16x256xf32>
    %85 = arith.addf %82, %84 : vector<16x256xf32>
    %cst_35 = arith.constant 0.000000e+00 : f32
    %86 = vector.broadcast %cst_35 : f32 to vector<16x256xf32>
    %87 = arith.maximumf %85, %86 : vector<16x256xf32>
    %c0_36 = arith.constant 0 : index
    %c0_37 = arith.constant 0 : index
    %88 = vector.load %arg11[%c0_36, %c0_37] : memref<256x32xf32, #tpu.memory_space<vmem>>, vector<256x32xf32>
    %cst_38 = arith.constant dense<0.000000e+00> : vector<16x32xf32>
    %89 = tpu.matmul %87, %88, %cst_38 {dimension_numbers = #tpu.dot_dimension_numbers<[1], [0], [0], [1], [0, 0, 1, 1], [], []>} : vector<16x256xf32>, vector<256x32xf32>, vector<16x32xf32> -> vector<16x32xf32>
    %c0_39 = arith.constant 0 : index
    %c0_40 = arith.constant 0 : index
    %90 = vector.load %arg12[%c0_39, %c0_40] : memref<1x32xf32, #tpu.memory_space<vmem>>, vector<1x32xf32>
    %91 = vector.broadcast %90 : vector<1x32xf32> to vector<16x32xf32>
    %92 = arith.addf %89, %91 : vector<16x32xf32>
    %93 = arith.addf %80, %92 : vector<16x32xf32>
    %c0_41 = arith.constant 0 : index
    %c0_42 = arith.constant 0 : index
    %94 = vector.load %arg13[%c0_41, %c0_42] : memref<1x32xf32, #tpu.memory_space<vmem>>, vector<1x32xf32>
    %c0_43 = arith.constant 0 : index
    %c0_44 = arith.constant 0 : index
    %95 = vector.load %arg14[%c0_43, %c0_44] : memref<1x32xf32, #tpu.memory_space<vmem>>, vector<1x32xf32>
    %cst_45 = arith.constant dense<0.000000e+00> : vector<16xf32>
    %96 = vector.multi_reduction <add>, %93, %cst_45 [1] : vector<16x32xf32> to vector<16xf32>
    %97 = vector.shape_cast %96 : vector<16xf32> to vector<16x1xf32>
    %cst_46 = arith.constant 3.200000e+01 : f32
    %98 = vector.broadcast %cst_46 : f32 to vector<16x1xf32>
    %99 = arith.divf %97, %98 : vector<16x1xf32>
    %100 = vector.broadcast %99 : vector<16x1xf32> to vector<16x32xf32>
    %101 = arith.subf %93, %100 : vector<16x32xf32>
    %102 = arith.mulf %101, %101 : vector<16x32xf32>
    %cst_47 = arith.constant dense<0.000000e+00> : vector<16xf32>
    %103 = vector.multi_reduction <add>, %102, %cst_47 [1] : vector<16x32xf32> to vector<16xf32>
    %104 = vector.shape_cast %103 : vector<16xf32> to vector<16x1xf32>
    %cst_48 = arith.constant 3.200000e+01 : f32
    %105 = vector.broadcast %cst_48 : f32 to vector<16x1xf32>
    %106 = arith.divf %104, %105 : vector<16x1xf32>
    %107 = vector.broadcast %99 : vector<16x1xf32> to vector<16x32xf32>
    %108 = arith.subf %93, %107 : vector<16x32xf32>
    %cst_49 = arith.constant 9.99999997E-7 : f32
    %109 = vector.broadcast %cst_49 : f32 to vector<16x1xf32>
    %110 = arith.addf %106, %109 : vector<16x1xf32>
    %111 = math.rsqrt %110 : vector<16x1xf32>
    %112 = vector.broadcast %111 : vector<16x1xf32> to vector<16x32xf32>
    %113 = arith.mulf %108, %112 : vector<16x32xf32>
    %114 = vector.broadcast %94 : vector<1x32xf32> to vector<16x32xf32>
    %115 = arith.mulf %113, %114 : vector<16x32xf32>
    %116 = vector.broadcast %95 : vector<1x32xf32> to vector<16x32xf32>
    %117 = arith.addf %115, %116 : vector<16x32xf32>
    %118 = vector.shape_cast %117 : vector<16x32xf32> to vector<2x8x32xf32>
    %c0_50 = arith.constant 0 : index
    %c0_51 = arith.constant 0 : index
    %c0_52 = arith.constant 0 : index
    %119 = vector.load %arg15[%c0_50, %c0_51, %c0_52] : memref<2x8x32xf32, #tpu.memory_space<vmem>>, vector<2x8x32xf32>
    tpu.vector_store %arg15[%c0_50, %c0_51, %c0_52], %118 {strides = array<i32>} : memref<2x8x32xf32, #tpu.memory_space<vmem>>, vector<2x8x32xf32>,
    return
  }
  func.func @transform_0(%arg0: i32) -> (i32, i32, i32) {
    %c0_i32 = arith.constant 0 : i32
    %c0_i32_0 = arith.constant 0 : i32
    %c0_i32_1 = arith.constant 0 : i32
    return %arg0, %c0_i32, %c0_i32_0 : i32, i32, i32
  }
  func.func @transform_1(%arg0: i32) -> (i32, i32) {
    %c0_i32 = arith.constant 0 : i32
    %c0_i32_0 = arith.constant 0 : i32
    %c0_i32_1 = arith.constant 0 : i32
    return %c0_i32, %c0_i32_0 : i32, i32
  }
  func.func @transform_2(%arg0: i32) -> (i32, i32) {
    %c0_i32 = arith.constant 0 : i32
    %c0_i32_0 = arith.constant 0 : i32
    %c0_i32_1 = arith.constant 0 : i32
    return %c0_i32, %c0_i32_0 : i32, i32
  }
  func.func @transform_3(%arg0: i32) -> (i32, i32) {
    %c0_i32 = arith.constant 0 : i32
    %c0_i32_0 = arith.constant 0 : i32
    %c0_i32_1 = arith.constant 0 : i32
    return %c0_i32, %c0_i32_0 : i32, i32
  }
  func.func @transform_4(%arg0: i32) -> (i32, i32) {
    %c0_i32 = arith.constant 0 : i32
    %c0_i32_0 = arith.constant 0 : i32
    %c0_i32_1 = arith.constant 0 : i32
    return %c0_i32, %c0_i32_0 : i32, i32
  }
  func.func @transform_5(%arg0: i32) -> (i32, i32) {
    %c0_i32 = arith.constant 0 : i32
    %c0_i32_0 = arith.constant 0 : i32
    %c0_i32_1 = arith.constant 0 : i32
    return %c0_i32, %c0_i32_0 : i32, i32
  }
  func.func @transform_6(%arg0: i32) -> (i32, i32) {
    %c0_i32 = arith.constant 0 : i32
    %c0_i32_0 = arith.constant 0 : i32
    %c0_i32_1 = arith.constant 0 : i32
    return %c0_i32, %c0_i32_0 : i32, i32
  }
  func.func @transform_7(%arg0: i32) -> (i32, i32) {
    %c0_i32 = arith.constant 0 : i32
    %c0_i32_0 = arith.constant 0 : i32
    %c0_i32_1 = arith.constant 0 : i32
    return %c0_i32, %c0_i32_0 : i32, i32
  }
  func.func @transform_8(%arg0: i32) -> (i32, i32) {
    %c0_i32 = arith.constant 0 : i32
    %c0_i32_0 = arith.constant 0 : i32
    %c0_i32_1 = arith.constant 0 : i32
    return %c0_i32, %c0_i32_0 : i32, i32
  }
  func.func @transform_9(%arg0: i32) -> (i32, i32) {
    %c0_i32 = arith.constant 0 : i32
    %c0_i32_0 = arith.constant 0 : i32
    %c0_i32_1 = arith.constant 0 : i32
    return %c0_i32, %c0_i32_0 : i32, i32
  }
  func.func @transform_10(%arg0: i32) -> (i32, i32) {
    %c0_i32 = arith.constant 0 : i32
    %c0_i32_0 = arith.constant 0 : i32
    %c0_i32_1 = arith.constant 0 : i32
    return %c0_i32, %c0_i32_0 : i32, i32
  }
  func.func @transform_11(%arg0: i32) -> (i32, i32) {
    %c0_i32 = arith.constant 0 : i32
    %c0_i32_0 = arith.constant 0 : i32
    %c0_i32_1 = arith.constant 0 : i32
    return %c0_i32, %c0_i32_0 : i32, i32
  }
  func.func @transform_12(%arg0: i32) -> (i32, i32) {
    %c0_i32 = arith.constant 0 : i32
    %c0_i32_0 = arith.constant 0 : i32
    %c0_i32_1 = arith.constant 0 : i32
    return %c0_i32, %c0_i32_0 : i32, i32
  }
  func.func @transform_13(%arg0: i32) -> (i32, i32) {
    %c0_i32 = arith.constant 0 : i32
    %c0_i32_0 = arith.constant 0 : i32
    %c0_i32_1 = arith.constant 0 : i32
    return %c0_i32, %c0_i32_0 : i32, i32
  }
  func.func @transform_14(%arg0: i32) -> (i32, i32, i32) {
    %c0_i32 = arith.constant 0 : i32
    %c0_i32_0 = arith.constant 0 : i32
    %c0_i32_1 = arith.constant 0 : i32
    return %arg0, %c0_i32, %c0_i32_0 : i32, i32, i32
  }
}

module attributes {stable_mosaic.version = 11 : i64} {
  func.func @encoder_layer_kernel(%arg0: i32, %arg1: memref<2x8x32xf32, #tpu.memory_space<vmem>>, %arg2: memref<8x8xf32, #tpu.memory_space<vmem>>, %arg3: memref<32x96xf32, #tpu.memory_space<vmem>>, %arg4: memref<1x96xf32, #tpu.memory_space<vmem>>, %arg5: memref<32x32xf32, #tpu.memory_space<vmem>>, %arg6: memref<1x32xf32, #tpu.memory_space<vmem>>, %arg7: memref<1x32xf32, #tpu.memory_space<vmem>>, %arg8: memref<1x32xf32, #tpu.memory_space<vmem>>, %arg9: memref<32x256xf32, #tpu.memory_space<vmem>>, %arg10: memref<1x256xf32, #tpu.memory_space<vmem>>, %arg11: memref<256x32xf32, #tpu.memory_space<vmem>>, %arg12: memref<1x32xf32, #tpu.memory_space<vmem>>, %arg13: memref<1x32xf32, #tpu.memory_space<vmem>>, %arg14: memref<1x32xf32, #tpu.memory_space<vmem>>, %arg15: memref<2x8x32xf32, #tpu.memory_space<vmem>>) attributes {dimension_semantics = [#tpu.dimension_semantics<parallel>], iteration_bounds = array<i64: 1>, scalar_prefetch = 0 : i64, scratch_operands = 0 : i64, tpu.core_type = #tpu.core_type<tc>, window_params = [{transform_indices = @transform_0, window_bounds = array<i64: 2, 8, 32>}, {pipeline_mode = #tpu.pipeline_mode<synchronous>, transform_indices = @transform_1, window_bounds = array<i64: 8, 8>}, {pipeline_mode = #tpu.pipeline_mode<synchronous>, transform_indices = @transform_2, window_bounds = array<i64: 32, 96>}, {pipeline_mode = #tpu.pipeline_mode<synchronous>, transform_indices = @transform_3, window_bounds = array<i64: 1, 96>}, {pipeline_mode = #tpu.pipeline_mode<synchronous>, transform_indices = @transform_4, window_bounds = array<i64: 32, 32>}, {pipeline_mode = #tpu.pipeline_mode<synchronous>, transform_indices = @transform_5, window_bounds = array<i64: 1, 32>}, {pipeline_mode = #tpu.pipeline_mode<synchronous>, transform_indices = @transform_6, window_bounds = array<i64: 1, 32>}, {pipeline_mode = #tpu.pipeline_mode<synchronous>, transform_indices = @transform_7, window_bounds = array<i64: 1, 32>}, {pipeline_mode = #tpu.pipeline_mode<synchronous>, transform_indices = @transform_8, window_bounds = array<i64: 32, 256>}, {pipeline_mode = #tpu.pipeline_mode<synchronous>, transform_indices = @transform_9, window_bounds = array<i64: 1, 256>}, {pipeline_mode = #tpu.pipeline_mode<synchronous>, transform_indices = @transform_10, window_bounds = array<i64: 256, 32>}, {pipeline_mode = #tpu.pipeline_mode<synchronous>, transform_indices = @transform_11, window_bounds = array<i64: 1, 32>}, {pipeline_mode = #tpu.pipeline_mode<synchronous>, transform_indices = @transform_12, window_bounds = array<i64: 1, 32>}, {pipeline_mode = #tpu.pipeline_mode<synchronous>, transform_indices = @transform_13, window_bounds = array<i64: 1, 32>}, {transform_indices = @transform_14, window_bounds = array<i64: 2, 8, 32>}]} {
    %c0 = arith.constant 0 : index
    %c0_0 = arith.constant 0 : index
    %c0_1 = arith.constant 0 : index
    %0 = vector.load %arg1[%c0, %c0_0, %c0_1] : memref<2x8x32xf32, #tpu.memory_space<vmem>>, vector<2x8x32xf32>
    %1 = vector.shape_cast %0 : vector<2x8x32xf32> to vector<16x32xf32>
    %c0_2 = arith.constant 0 : index
    %c0_3 = arith.constant 0 : index
    %2 = vector.load %arg3[%c0_2, %c0_3] : memref<32x96xf32, #tpu.memory_space<vmem>>, vector<32x96xf32>
    %cst = arith.constant dense<0.000000e+00> : vector<16x96xf32>
    %3 = tpu.matmul %1, %2, %cst {dimension_numbers = #tpu.dot_dimension_numbers<[1], [0], [0], [1], [0, 0, 1, 1], [], []>} : vector<16x32xf32>, vector<32x96xf32>, vector<16x96xf32> -> vector<16x96xf32>
    %c0_4 = arith.constant 0 : index
    %c0_5 = arith.constant 0 : index
    %4 = vector.load %arg4[%c0_4, %c0_5] : memref<1x96xf32, #tpu.memory_space<vmem>>, vector<1x96xf32>
    %5 = vector.broadcast %4 : vector<1x96xf32> to vector<16x96xf32>
    %6 = arith.addf %3, %5 : vector<16x96xf32>
    %c0_6 = arith.constant 0 : index
    %c0_7 = arith.constant 0 : index
    %7 = vector.load %arg2[%c0_6, %c0_7] : memref<8x8xf32, #tpu.memory_space<vmem>>, vector<8x8xf32>
    %8 = vector.shape_cast %7 : vector<8x8xf32> to vector<1x8x8xf32>
    %9 = vector.shape_cast %8 : vector<1x8x8xf32> to vector<1x8x8xf32>
    %10 = vector.broadcast %9 : vector<1x8x8xf32> to vector<2x8x8xf32>
    %11 = vector.extract_strided_slice %6 {offsets = [0, 0], sizes = [16, 16], strides = [1, 1]} : vector<16x96xf32> to vector<16x16xf32>
    %12 = vector.shape_cast %11 : vector<16x16xf32> to vector<2x8x16xf32>
    %13 = vector.extract_strided_slice %6 {offsets = [0, 32], sizes = [16, 16], strides = [1, 1]} : vector<16x96xf32> to vector<16x16xf32>
    %14 = vector.shape_cast %13 : vector<16x16xf32> to vector<2x8x16xf32>
    %15 = vector.extract_strided_slice %6 {offsets = [0, 64], sizes = [16, 16], strides = [1, 1]} : vector<16x96xf32> to vector<16x16xf32>
    %16 = vector.shape_cast %15 : vector<16x16xf32> to vector<2x8x16xf32>
    "tpu.trace_start"() <{level = 10 : i32, message = "tqd,tkd->tqk"}> : () -> ()
    %cst_8 = arith.constant dense<0.000000e+00> : vector<2x8x8xf32>
    %17 = tpu.matmul %12, %14, %cst_8 {dimension_numbers = #tpu.dot_dimension_numbers<[2], [2], [1], [1], [0, 0, 0, 1, 1, 1], [0], [0]>} : vector<2x8x16xf32>, vector<2x8x16xf32>, vector<2x8x8xf32> -> vector<2x8x8xf32>
    "tpu.trace_stop"() : () -> ()
    %18 = arith.addf %17, %10 : vector<2x8x8xf32>
    %cst_9 = arith.constant dense<0xFF800000> : vector<2x8xf32>
    %19 = vector.multi_reduction <maximumf>, %18, %cst_9 [2] : vector<2x8x8xf32> to vector<2x8xf32>
    %20 = vector.shape_cast %19 : vector<2x8xf32> to vector<2x8x1xf32>
    %21 = vector.broadcast %20 : vector<2x8x1xf32> to vector<2x8x8xf32>
    %22 = arith.subf %18, %21 : vector<2x8x8xf32>
    %23 = math.exp %22 : vector<2x8x8xf32>
    %cst_10 = arith.constant dense<0.000000e+00> : vector<2x8xf32>
    %24 = vector.multi_reduction <add>, %23, %cst_10 [2] : vector<2x8x8xf32> to vector<2x8xf32>
    %25 = vector.shape_cast %24 : vector<2x8xf32> to vector<2x8x1xf32>
    %26 = tpu.reciprocal %25 {approx = true} : vector<2x8x1xf32> -> vector<2x8x1xf32>
    "tpu.trace_start"() <{level = 10 : i32, message = "tqk,tkd->tqd"}> : () -> ()
    %cst_11 = arith.constant dense<0.000000e+00> : vector<2x8x16xf32>
    %27 = tpu.matmul %23, %16, %cst_11 {dimension_numbers = #tpu.dot_dimension_numbers<[2], [1], [1], [2], [0, 0, 0, 1, 1, 2], [0], [0]>} : vector<2x8x8xf32>, vector<2x8x16xf32>, vector<2x8x16xf32> -> vector<2x8x16xf32>
    "tpu.trace_stop"() : () -> ()
    %28 = vector.broadcast %26 : vector<2x8x1xf32> to vector<2x8x16xf32>
    %29 = arith.mulf %27, %28 : vector<2x8x16xf32>
    %30 = vector.extract_strided_slice %6 {offsets = [0, 16], sizes = [16, 16], strides = [1, 1]} : vector<16x96xf32> to vector<16x16xf32>
    %31 = vector.shape_cast %30 : vector<16x16xf32> to vector<2x8x16xf32>
    %32 = vector.extract_strided_slice %6 {offsets = [0, 48], sizes = [16, 16], strides = [1, 1]} : vector<16x96xf32> to vector<16x16xf32>
    %33 = vector.shape_cast %32 : vector<16x16xf32> to vector<2x8x16xf32>
    %34 = vector.extract_strided_slice %6 {offsets = [0, 80], sizes = [16, 16], strides = [1, 1]} : vector<16x96xf32> to vector<16x16xf32>
    %35 = vector.shape_cast %34 : vector<16x16xf32> to vector<2x8x16xf32>
    "tpu.trace_start"() <{level = 10 : i32, message = "tqd,tkd->tqk"}> : () -> ()
    %cst_12 = arith.constant dense<0.000000e+00> : vector<2x8x8xf32>
    %36 = tpu.matmul %31, %33, %cst_12 {dimension_numbers = #tpu.dot_dimension_numbers<[2], [2], [1], [1], [0, 0, 0, 1, 1, 1], [0], [0]>} : vector<2x8x16xf32>, vector<2x8x16xf32>, vector<2x8x8xf32> -> vector<2x8x8xf32>
    "tpu.trace_stop"() : () -> ()
    %37 = arith.addf %36, %10 : vector<2x8x8xf32>
    %cst_13 = arith.constant dense<0xFF800000> : vector<2x8xf32>
    %38 = vector.multi_reduction <maximumf>, %37, %cst_13 [2] : vector<2x8x8xf32> to vector<2x8xf32>
    %39 = vector.shape_cast %38 : vector<2x8xf32> to vector<2x8x1xf32>
    %40 = vector.broadcast %39 : vector<2x8x1xf32> to vector<2x8x8xf32>
    %41 = arith.subf %37, %40 : vector<2x8x8xf32>
    %42 = math.exp %41 : vector<2x8x8xf32>
    %cst_14 = arith.constant dense<0.000000e+00> : vector<2x8xf32>
    %43 = vector.multi_reduction <add>, %42, %cst_14 [2] : vector<2x8x8xf32> to vector<2x8xf32>
    %44 = vector.shape_cast %43 : vector<2x8xf32> to vector<2x8x1xf32>
    %45 = tpu.reciprocal %44 {approx = true} : vector<2x8x1xf32> -> vector<2x8x1xf32>
    "tpu.trace_start"() <{level = 10 : i32, message = "tqk,tkd->tqd"}> : () -> ()
    %cst_15 = arith.constant dense<0.000000e+00> : vector<2x8x16xf32>
    %46 = tpu.matmul %42, %35, %cst_15 {dimension_numbers = #tpu.dot_dimension_numbers<[2], [1], [1], [2], [0, 0, 0, 1, 1, 2], [0], [0]>} : vector<2x8x8xf32>, vector<2x8x16xf32>, vector<2x8x16xf32> -> vector<2x8x16xf32>
    "tpu.trace_stop"() : () -> ()
    %47 = vector.broadcast %45 : vector<2x8x1xf32> to vector<2x8x16xf32>
    %48 = arith.mulf %46, %47 : vector<2x8x16xf32>
    %49 = tpu.concatenate %29, %48 in 2 : vector<2x8x16xf32>, vector<2x8x16xf32> -> vector<2x8x32xf32>
    %50 = vector.shape_cast %49 : vector<2x8x32xf32> to vector<16x32xf32>
    %c0_16 = arith.constant 0 : index
    %c0_17 = arith.constant 0 : index
    %51 = vector.load %arg5[%c0_16, %c0_17] : memref<32x32xf32, #tpu.memory_space<vmem>>, vector<32x32xf32>
    %cst_18 = arith.constant dense<0.000000e+00> : vector<16x32xf32>
    %52 = tpu.matmul %50, %51, %cst_18 {dimension_numbers = #tpu.dot_dimension_numbers<[1], [0], [0], [1], [0, 0, 1, 1], [], []>} : vector<16x32xf32>, vector<32x32xf32>, vector<16x32xf32> -> vector<16x32xf32>
    %c0_19 = arith.constant 0 : index
    %c0_20 = arith.constant 0 : index
    %53 = vector.load %arg6[%c0_19, %c0_20] : memref<1x32xf32, #tpu.memory_space<vmem>>, vector<1x32xf32>
    %54 = vector.broadcast %53 : vector<1x32xf32> to vector<16x32xf32>
    %55 = arith.addf %52, %54 : vector<16x32xf32>
    %56 = arith.addf %1, %55 : vector<16x32xf32>
    %c0_21 = arith.constant 0 : index
    %c0_22 = arith.constant 0 : index
    %57 = vector.load %arg7[%c0_21, %c0_22] : memref<1x32xf32, #tpu.memory_space<vmem>>, vector<1x32xf32>
    %c0_23 = arith.constant 0 : index
    %c0_24 = arith.constant 0 : index
    %58 = vector.load %arg8[%c0_23, %c0_24] : memref<1x32xf32, #tpu.memory_space<vmem>>, vector<1x32xf32>
    %cst_25 = arith.constant dense<0.000000e+00> : vector<16xf32>
    %59 = vector.multi_reduction <add>, %56, %cst_25 [1] : vector<16x32xf32> to vector<16xf32>
    %60 = vector.shape_cast %59 : vector<16xf32> to vector<16x1xf32>
    %cst_26 = arith.constant 3.200000e+01 : f32
    %61 = vector.broadcast %cst_26 : f32 to vector<16x1xf32>
    %62 = arith.divf %60, %61 : vector<16x1xf32>
    %63 = vector.broadcast %62 : vector<16x1xf32> to vector<16x32xf32>
    %64 = arith.subf %56, %63 : vector<16x32xf32>
    %65 = arith.mulf %64, %64 : vector<16x32xf32>
    %cst_27 = arith.constant dense<0.000000e+00> : vector<16xf32>
    %66 = vector.multi_reduction <add>, %65, %cst_27 [1] : vector<16x32xf32> to vector<16xf32>
    %67 = vector.shape_cast %66 : vector<16xf32> to vector<16x1xf32>
    %cst_28 = arith.constant 3.200000e+01 : f32
    %68 = vector.broadcast %cst_28 : f32 to vector<16x1xf32>
    %69 = arith.divf %67, %68 : vector<16x1xf32>
    %70 = vector.broadcast %62 : vector<16x1xf32> to vector<16x32xf32>
    %71 = arith.subf %56, %70 : vector<16x32xf32>
    %cst_29 = arith.constant 9.99999997E-7 : f32
    %72 = vector.broadcast %cst_29 : f32 to vector<16x1xf32>
    %73 = arith.addf %69, %72 : vector<16x1xf32>
    %74 = math.rsqrt %73 : vector<16x1xf32>
    %75 = vector.broadcast %74 : vector<16x1xf32> to vector<16x32xf32>
    %76 = arith.mulf %71, %75 : vector<16x32xf32>
    %77 = vector.broadcast %57 : vector<1x32xf32> to vector<16x32xf32>
    %78 = arith.mulf %76, %77 : vector<16x32xf32>
    %79 = vector.broadcast %58 : vector<1x32xf32> to vector<16x32xf32>
    %80 = arith.addf %78, %79 : vector<16x32xf32>
    %c0_30 = arith.constant 0 : index
    %c0_31 = arith.constant 0 : index
    %81 = vector.load %arg9[%c0_30, %c0_31] : memref<32x256xf32, #tpu.memory_space<vmem>>, vector<32x256xf32>
    %cst_32 = arith.constant dense<0.000000e+00> : vector<16x256xf32>
    %82 = tpu.matmul %80, %81, %cst_32 {dimension_numbers = #tpu.dot_dimension_numbers<[1], [0], [0], [1], [0, 0, 1, 1], [], []>} : vector<16x32xf32>, vector<32x256xf32>, vector<16x256xf32> -> vector<16x256xf32>
    %c0_33 = arith.constant 0 : index
    %c0_34 = arith.constant 0 : index
    %83 = vector.load %arg10[%c0_33, %c0_34] : memref<1x256xf32, #tpu.memory_space<vmem>>, vector<1x256xf32>
    %84 = vector.broadcast %83 : vector<1x256xf32> to vector<16x256xf32>
    %85 = arith.addf %82, %84 : vector<16x256xf32>
    %cst_35 = arith.constant 0.000000e+00 : f32
    %86 = vector.broadcast %cst_35 : f32 to vector<16x256xf32>
    %87 = arith.maximumf %85, %86 : vector<16x256xf32>
    %c0_36 = arith.constant 0 : index
    %c0_37 = arith.constant 0 : index
    %88 = vector.load %arg11[%c0_36, %c0_37] : memref<256x32xf32, #tpu.memory_space<vmem>>, vector<256x32xf32>
    %cst_38 = arith.constant dense<0.000000e+00> : vector<16x32xf32>
    %89 = tpu.matmul %87, %88, %cst_38 {dimension_numbers = #tpu.dot_dimension_numbers<[1], [0], [0], [1], [0, 0, 1, 1], [], []>} : vector<16x256xf32>, vector<256x32xf32>, vector<16x32xf32> -> vector<16x32xf32>
    %c0_39 = arith.constant 0 : index
    %c0_40 = arith.constant 0 : index
    %90 = vector.load %arg12[%c0_39, %c0_40] : memref<1x32xf32, #tpu.memory_space<vmem>>, vector<1x32xf32>
    %91 = vector.broadcast %90 : vector<1x32xf32> to vector<16x32xf32>
    %92 = arith.addf %89, %91 : vector<16x32xf32>
    %93 = arith.addf %80, %92 : vector<16x32xf32>
    %c0_41 = arith.constant 0 : index
    %c0_42 = arith.constant 0 : index
    %94 = vector.load %arg13[%c0_41, %c0_42] : memref<1x32xf32, #tpu.memory_space<vmem>>, vector<1x32xf32>
    %c0_43 = arith.constant 0 : index
    %c0_44 = arith.constant 0 : index
    %95 = vector.load %arg14[%c0_43, %c0_44] : memref<1x32xf32, #tpu.memory_space<vmem>>, vector<1x32xf32>
    %cst_45 = arith.constant dense<0.000000e+00> : vector<16xf32>
    %96 = vector.multi_reduction <add>, %93, %cst_45 [1] : vector<16x32xf32> to vector<16xf32>
    %97 = vector.shape_cast %96 : vector<16xf32> to vector<16x1xf32>
    %cst_46 = arith.constant 3.200000e+01 : f32
    %98 = vector.broadcast %cst_46 : f32 to vector<16x1xf32>
    %99 = arith.divf %97, %98 : vector<16x1xf32>
    %100 = vector.broadcast %99 : vector<16x1xf32> to vector<16x32xf32>
    %101 = arith.subf %93, %100 : vector<16x32xf32>
    %102 = arith.mulf %101, %101 : vector<16x32xf32>
    %cst_47 = arith.constant dense<0.000000e+00> : vector<16xf32>
    %103 = vector.multi_reduction <add>, %102, %cst_47 [1] : vector<16x32xf32> to vector<16xf32>
    %104 = vector.shape_cast %103 : vector<16xf32> to vector<16x1xf32>
    %cst_48 = arith.constant 3.200000e+01 : f32
    %105 = vector.broadcast %cst_48 : f32 to vector<16x1xf32>
    %106 = arith.divf %104, %105 : vector<16x1xf32>
    %107 = vector.broadcast %99 : vector<16x1xf32> to vector<16x32xf32>
    %108 = arith.subf %93, %107 : vector<16x32xf32>
    %cst_49 = arith.constant 9.99999997E-7 : f32
    %109 = vector.broadcast %cst_49 : f32 to vector<16x1xf32>
    %110 = arith.addf %106, %109 : vector<16x1xf32>
    %111 = math.rsqrt %110 : vector<16x1xf32>
    %112 = vector.broadcast %111 : vector<16x1xf32> to vector<16x32xf32>
    %113 = arith.mulf %108, %112 : vector<16x32xf32>
    %114 = vector.broadcast %94 : vector<1x32xf32> to vector<16x32xf32>
    %115 = arith.mulf %113, %114 : vector<16x32xf32>
    %116 = vector.broadcast %95 : vector<1x32xf32> to vector<16x32xf32>
    %117 = arith.addf %115, %116 : vector<16x32xf32>
    %118 = vector.shape_cast %117 : vector<16x32xf32> to vector<2x8x32xf32>
    %c0_50 = arith.constant 0 : index
    %c0_51 = arith.constant 0 : index
    %c0_52 = arith.constant 0 : index
    %119 = vector.load %arg15[%c0_50, %c0_51, %c0_52] : memref<2x8x32xf32, #tpu.memory_space<vmem>>, vector<2x8x32xf32>
    tpu.vector_store %arg15[%c0_50, %c0_51, %c0_52], %118 {strides = array<i32>} : memref<2x8x32xf32, #tpu.memory_space<vmem>>, vector<2x8x32xf32>,
    return
  }
  func.func @transform_0(%arg0: i32) -> (i32, i32, i32) {
    %c0_i32 = arith.constant 0 : i32
    %c0_i32_0 = arith.constant 0 : i32
    %c0_i32_1 = arith.constant 0 : i32
    return %arg0, %c0_i32, %c0_i32_0 : i32, i32, i32
  }
  func.func @transform_1(%arg0: i32) -> (i32, i32) {
    %c0_i32 = arith.constant 0 : i32
    %c0_i32_0 = arith.constant 0 : i32
    %c0_i32_1 = arith.constant 0 : i32
    return %c0_i32, %c0_i32_0 : i32, i32
  }
  func.func @transform_2(%arg0: i32) -> (i32, i32) {
    %c0_i32 = arith.constant 0 : i32
    %c0_i32_0 = arith.constant 0 : i32
    %c0_i32_1 = arith.constant 0 : i32
    return %c0_i32, %c0_i32_0 : i32, i32
  }
  func.func @transform_3(%arg0: i32) -> (i32, i32) {
    %c0_i32 = arith.constant 0 : i32
    %c0_i32_0 = arith.constant 0 : i32
    %c0_i32_1 = arith.constant 0 : i32
    return %c0_i32, %c0_i32_0 : i32, i32
  }
  func.func @transform_4(%arg0: i32) -> (i32, i32) {
    %c0_i32 = arith.constant 0 : i32
    %c0_i32_0 = arith.constant 0 : i32
    %c0_i32_1 = arith.constant 0 : i32
    return %c0_i32, %c0_i32_0 : i32, i32
  }
  func.func @transform_5(%arg0: i32) -> (i32, i32) {
    %c0_i32 = arith.constant 0 : i32
    %c0_i32_0 = arith.constant 0 : i32
    %c0_i32_1 = arith.constant 0 : i32
    return %c0_i32, %c0_i32_0 : i32, i32
  }
  func.func @transform_6(%arg0: i32) -> (i32, i32) {
    %c0_i32 = arith.constant 0 : i32
    %c0_i32_0 = arith.constant 0 : i32
    %c0_i32_1 = arith.constant 0 : i32
    return %c0_i32, %c0_i32_0 : i32, i32
  }
  func.func @transform_7(%arg0: i32) -> (i32, i32) {
    %c0_i32 = arith.constant 0 : i32
    %c0_i32_0 = arith.constant 0 : i32
    %c0_i32_1 = arith.constant 0 : i32
    return %c0_i32, %c0_i32_0 : i32, i32
  }
  func.func @transform_8(%arg0: i32) -> (i32, i32) {
    %c0_i32 = arith.constant 0 : i32
    %c0_i32_0 = arith.constant 0 : i32
    %c0_i32_1 = arith.constant 0 : i32
    return %c0_i32, %c0_i32_0 : i32, i32
  }
  func.func @transform_9(%arg0: i32) -> (i32, i32) {
    %c0_i32 = arith.constant 0 : i32
    %c0_i32_0 = arith.constant 0 : i32
    %c0_i32_1 = arith.constant 0 : i32
    return %c0_i32, %c0_i32_0 : i32, i32
  }
  func.func @transform_10(%arg0: i32) -> (i32, i32) {
    %c0_i32 = arith.constant 0 : i32
    %c0_i32_0 = arith.constant 0 : i32
    %c0_i32_1 = arith.constant 0 : i32
    return %c0_i32, %c0_i32_0 : i32, i32
  }
  func.func @transform_11(%arg0: i32) -> (i32, i32) {
    %c0_i32 = arith.constant 0 : i32
    %c0_i32_0 = arith.constant 0 : i32
    %c0_i32_1 = arith.constant 0 : i32
    return %c0_i32, %c0_i32_0 : i32, i32
  }
  func.func @transform_12(%arg0: i32) -> (i32, i32) {
    %c0_i32 = arith.constant 0 : i32
    %c0_i32_0 = arith.constant 0 : i32
    %c0_i32_1 = arith.constant 0 : i32
    return %c0_i32, %c0_i32_0 : i32, i32
  }
  func.func @transform_13(%arg0: i32) -> (i32, i32) {
    %c0_i32 = arith.constant 0 : i32
    %c0_i32_0 = arith.constant 0 : i32
    %c0_i32_1 = arith.constant 0 : i32
    return %c0_i32, %c0_i32_0 : i32, i32
  }
  func.func @transform_14(%arg0: i32) -> (i32, i32, i32) {
    %c0_i32 = arith.constant 0 : i32
    %c0_i32_0 = arith.constant 0 : i32
    %c0_i32_1 = arith.constant 0 : i32
    return %arg0, %c0_i32, %c0_i32_0 : i32, i32, i32
  }
}

</mosaic_0001>

<bundles_post_ra>
// kernel: tpu_custom_call.1
= control target key start
LH: loop header
LB: loop body
LE: loop exit
PB: predicated region body
PF: predicated region fallthrough
CT: control target
= control target key end

     0   :  { %s1118_s0 = inlined_call_operand.vmem [shape: f32[2,8,32], index: 0, kind: input, shape index: {}]   ;;  %s1119_s1 = inlined_call_operand.vmem [shape: f32[8,8], index: 1, kind: input, shape index: {}]   ;;  %s1120_s2 = inlined_call_operand.vmem [shape: f32[32,96], index: 2, kind: input, shape index: {}]   ;;  %s1121_s3 = inlined_call_operand.vmem [shape: f32[1,96], index: 3, kind: input, shape index: {}]   ;;  %s1122_s4 = inlined_call_operand.vmem [shape: f32[32,32], index: 4, kind: input, shape index: {}]   ;;  %s1123_s5 = inlined_call_operand.vmem [shape: f32[1,32], index: 5, kind: input, shape index: {}]   ;;  %s1124_s6 = inlined_call_operand.vmem [shape: f32[1,32], index: 6, kind: input, shape index: {}]   ;;  %s1125_s7 = inlined_call_operand.vmem [shape: f32[1,32], index: 7, kind: input, shape index: {}]   ;;  %s1126_s8 = inlined_call_operand.vmem [shape: f32[32,256], index: 8, kind: input, shape index: {}]   ;;  %s1127_s9 = inlined_call_operand.vmem [shape: f32[1,256], index: 9, kind: input, shape index: {}]   ;;  %s1128_s10 = inlined_call_operand.vmem [shape: f32[256,32], index: 10, kind: input, shape index: {}]   ;;  %s1129_s11 = inlined_call_operand.vmem [shape: f32[1,32], index: 11, kind: input, shape index: {}]   ;;  %s1130_s12 = inlined_call_operand.vmem [shape: f32[1,32], index: 12, kind: input, shape index: {}]   ;;  %s1131_s13 = inlined_call_operand.vmem [shape: f32[1,32], index: 13, kind: input, shape index: {}]   ;;  %s1132_s14 = inlined_call_operand.hbm [shape: f32[2,8,32], index: 14, kind: output, shape index: {}]  }
   0x1   :  { %v53_v0 = vld [vmem:[%s1120_s2 + $0x18] sm:$0xff]  ;;  %v52_v1 = vld [vmem:[%s1120_s2 + $0x10] sm:$0xff]  ;;  %v51_v2 = vld [vmem:[%s1120_s2 + $0x8] sm:$0xff] }
   0x2   :  { %77 = vmatpush.msra.mxu0 %v53_v0  ;;  %v50_v3 = vld [vmem:[%s1120_s2] sm:$0xff] }
   0x4   :  { %78 = vmatpush.msra.mxu0 %v52_v1 }
   0x5   :  { %19 = vsyncpa [#allocation3], 0  ;;  %v885_v4 = vld [vmem:[%s1118_s0] sm:$0xff]  ;;  %vm58_vm0 = vcmask 261120   ;;  %v892_v5 = vld [vmem:[%s1118_s0 + $0x8] sm:$0xff]  ;;  %s785_s26 = smov 80  }
   0x6   :  { %79 = vmatpush.msra.mxu0 %v51_v2  ;;  %v726_v6 = vld [vmem:[%s1121_s3] ss:$0 sm:$0xff]  ;;  %s786_s27 = smov 96   ;;  %s787_s28 = smov 112   ;;  %vm92_vm1 = vcmask 130048   ;;  %vm144_vm2 = vcmask 64512  }
   0x7   :  { %s788_s0 = smov 64   ;;  %v88_v21 = vld [vmem:[%s1119_s1] sm:$0xff]  ;;  %s789_s30 = smov 48   ;;  %v362_v56 = vld [vmem:[%s1122_s4 + $0x18] sm:$0xff]  ;;  %v361_v57 = vld [vmem:[%s1122_s4 + $0x10] sm:$0xff] }
   0x8   :  { %80 = vmatpush.msra.mxu0 %v50_v3  ;;  %v360_v58 = vld [vmem:[%s1122_s4 + $0x8] sm:$0xff]  ;;  %s790_s20 = smov 16   ;;  %s793_s21 = smov 128  }
   0x9   :  { %691 = vmatmul.msk.f32.vlgmr.msra.gmra.mxu0 %vm58_vm0, %v885_v4  ;;  %s794_s22 = smov 8  }
  0x11   :  { %692 = vmatmul.msk.f32.gmra.mxu0 %vm58_vm0, %v892_v5 }
  0x86   :  { %v82_v7 = vpop.f32.mrf.mxu0 }
  0x87   :  { %v83_v8 = vadd.f32 %v726_v6, %v82_v7  ;;  %v359_v7 = vld [vmem:[%s1122_s4] sm:$0xff] }
  0x89   :  { %221 = vrot.lane.b32.xlu1 %v83_v8, %s785_s26  ;;  %90 = vrot.lane.b32.xlu0 %v83_v8, %s786_s27 }
  0x8e   :  { %v85_v9 = vpop.f32.mrf.mxu0 }
  0x8f   :  { %v86_v10 = vadd.f32 %v726_v6, %v85_v9 }
  0x91   :  { %249 = vrot.lane.b32.xlu2 %v86_v10, %s785_s26  ;;  %219 = vrot.lane.b32.xlu1 %v83_v8, %s787_s28  ;;  %v721_v11 = vpack.i.bf16 %v86_v10, %v83_v8 }
  0x92   :  { %118 = vrot.lane.b32.xlu0 %v86_v10, %s786_s27 }
  0x99   :  { %247 = vrot.lane.b32.xlu2 %v86_v10, %s787_s28 }
  0xa1   :  { %722 = vrot.lane.b32.xlu2 %v721_v11, %s788_s0 }
  0xeb   :  { %v250_v12 = vpop.permute.xlu2 %249 }
  0xec   :  { %701 = vmatpush.xpose.msk.msra.mxu2 %vm92_vm1, %v250_v12 }
  0xf3   :  { %v248_v13 = vpop.permute.xlu2 %247 }
  0xf4   :  { %702 = vmatmul.msk.f32.vlgmr.msra.gmra.mxu2 %vm92_vm1, %v248_v13 }
  0xfb   :  { %v222_v14 = vpop.permute.xlu1 %221  ;;  %v91_v15 = vpop.permute.xlu0 %90 }
  0xfc   :  { %693 = vmatpush.xpose.msk.msrb.mxu0 %vm92_vm1, %v91_v15  ;;  %v723_v16 = vpop.permute.xlu2 %722 }
  0xfd   :  { %v724_v18 = vunpack.i.l.bf16 %v723_v16  ;;  %v725_v19 = vunpack.i.h.bf16 %v723_v16 }
  0xff   :  { %694 = vmatmul.msk.f32.vlgmr.msrb.gmra.mxu0 %vm92_vm1, %v83_v8 }
 0x100   :  { %699 = vmatpush.xpose.msk.msra.mxu0 %vm92_vm1, %v222_v14 }
 0x103   :  { %v220_v20 = vpop.permute.xlu1 %219 }
 0x104   :  { %v119_v17 = vpop.permute.xlu0 %118 }
 0x105   :  { %695 = vmatpush.xpose.msk.msra.mxu3 %vm92_vm1, %v119_v17 }
 0x107   :  { %700 = vmatmul.msk.f32.vlgmr.msra.gmra.mxu0 %vm92_vm1, %v220_v20 }
 0x108   :  { %696 = vmatmul.msk.f32.vlgmr.msra.gmra.mxu3 %vm92_vm1, %v86_v10 }
 0x109   :  { %186 = vmatpush.msrb.mxu3 %v724_v18  ;;  %v727_v18 = vld [vmem:[%s1123_s5] ss:$0 sm:$0xff] }
 0x10b   :  { %212 = vmatpush.msra.mxu3 %v725_v19 }
 0x177   :  { %v272_v31 = vpop.f32.mrf.mxu2 }
 0x178   :  { %v273_v32 = vadd.f32 %v272_v31, %v88_v21 }
 0x17a   :  { %v278_v33 = vsel %vm144_vm2, %v273_v32, -inf }
 0x17c   :  { %v114_v22 = vpop.f32.mrf.mxu0 }
 0x17d   :  { %v115_v23 = vadd.f32 %v114_v22, %v88_v21 }
 0x17f   :  { %v145_v24 = vsel %vm144_vm2, %v115_v23, -inf }
 0x180   :  { %146 = vmax.xlane.f32.xlu0 %v145_v24 }
 0x184   :  { %v244_v25 = vpop.f32.mrf.mxu0 }
 0x185   :  { %v245_v26 = vadd.f32 %v244_v25, %v88_v21 }
 0x187   :  { %v275_v27 = vsel %vm144_vm2, %v245_v26, -inf }
 0x188   :  { %276 = vmax.xlane.f32.xlu2 %v275_v27  ;;  %v791_v27 = vmov 32.0  }
 0x18b   :  { %v141_v28 = vpop.f32.mrf.mxu3 }
 0x18c   :  { %v142_v29 = vadd.f32 %v141_v28, %v88_v21 }
 0x18e   :  { %v148_v30 = vsel %vm144_vm2, %v142_v29, -inf }
 0x18f   :  { %149 = vmax.xlane.f32.xlu1 %v148_v30 }
 0x194   :  { %295 = vrot.lane.b32.xlu0 %v83_v8, %s789_s30 }
 0x197   :  { %279 = vmax.xlane.f32.xlu1 %v278_v33 }
 0x1a0   :  { %321 = vrot.lane.b32.xlu2 %v86_v10, %s789_s30 }
 0x1f3   :  { %v147_v34 = vpop.xlane.xlu0 %146 }
 0x1f4   :  { %v151_v35 = vsub.f32 %v115_v23, %v147_v34 }
 0x1f6   :  { %v153_v36 = vmul.f32 1.442695, %v151_v35 }
 0x1f8   :  { %733 = vpow2.f32 %v153_v36 }
 0x1fb   :  { %v277_v37 = vpop.xlane.xlu2 %276 }
 0x1fc   :  { %v281_v38 = vsub.f32 %v245_v26, %v277_v37 }
 0x1fe   :  { %v734_v39 = vpop.eup %733  ;;  %v283_v40 = vmul.f32 1.442695, %v281_v38 }
 0x1ff   :  { %697 = vmatmul.msk.f32.vlgmr.msrb.gmra.mxu3 %vm144_vm2, %v734_v39  ;;  %v157_v41 = vsel %vm144_vm2, %v734_v39, 0.0 }
 0x200   :  { %735 = vpow2.f32 %v283_v40  ;;  %158 = vadd.xlane.f32.xlu0 %v157_v41 }
 0x202   :  { %v150_v42 = vpop.xlane.xlu1 %149 }
 0x203   :  { %v152_v43 = vsub.f32 %v142_v29, %v150_v42  ;;  %v322_v44 = vpop.permute.xlu2 %321  ;;  %v467_v42 = vld [vmem:[%s1126_s8 + $0x30] sm:$0xff] }
 0x204   :  { %342 = vmatpush.msra.mxu1 %v322_v44  ;;  %493 = vmatpush.msrb.mxu0 %v467_v42  ;;  %v465_v44 = vld [vmem:[%s1126_s8 + $0x20] sm:$0xff] }
 0x205   :  { %v155_v45 = vmul.f32 1.442695, %v152_v43  ;;  %v468_v43 = vld [vmem:[%s1126_s8 + $0x38] sm:$0xff]  ;;  %v531_v42 = vld [vmem:[%s1128_s10] sm:$0xff] }
 0x206   :  { %v736_v46 = vpop.eup %735  ;;  %v296_v47 = vpop.permute.xlu0 %295  ;;  %385 = vmatpush.msrb.mxu1 %v362_v56  ;;  %494 = vmatpush.msrb.mxu0 %v465_v44  ;;  %v546_v56 = vld [vmem:[%s1128_s10 + $0x78] sm:$0xff]  ;;  %v549_v44 = vld [vmem:[%s1128_s10 + $0x90] sm:$0xff] }
 0x207   :  { %737 = vpow2.f32 %v155_v45  ;;  %316 = vmatpush.msrb.mxu3 %v296_v47  ;;  %v287_v48 = vsel %vm144_vm2, %v736_v46, 0.0  ;;  %v466_v45 = vld [vmem:[%s1126_s8 + $0x28] sm:$0xff]  ;;  %v464_v47 = vld [vmem:[%s1126_s8 + $0x18] sm:$0xff] }
 0x208   :  { %288 = vadd.xlane.f32.xlu1 %v287_v48  ;;  %386 = vmatpush.msrb.mxu1 %v361_v57  ;;  %v461_v48 = vld [vmem:[%s1126_s8] sm:$0xff]  ;;  %v545_v57 = vld [vmem:[%s1128_s10 + $0x70] sm:$0xff] }
 0x20a   :  { %v280_v49 = vpop.xlane.xlu1 %279  ;;  %387 = vmatpush.msrb.mxu1 %v360_v58 }
 0x20b   :  { %v282_v50 = vsub.f32 %v273_v32, %v280_v49  ;;  %v462_v49 = vld [vmem:[%s1126_s8 + $0x8] sm:$0xff] }
 0x20c   :  { %388 = vmatpush.msrb.mxu1 %v359_v7  ;;  %v728_v7 = vld [vmem:[%s1124_s6] ss:$0 sm:$0xff] }
 0x20d   :  { %v738_v51 = vpop.eup %737  ;;  %v285_v52 = vmul.f32 1.442695, %v282_v50 }
 0x20e   :  { %698 = vmatmul.msk.f32.vlgmr.msra.gmra.mxu3 %vm144_vm2, %v738_v51  ;;  %v160_v55 = vsel %vm144_vm2, %v738_v51, 0.0 }
 0x20f   :  { %739 = vpow2.f32 %v285_v52  ;;  %516 = vmatpush.msra.mxu3 %v468_v43  ;;  %v550_v43 = vld [vmem:[%s1128_s10 + $0x98] sm:$0xff] }
 0x211   :  { %517 = vmatpush.msra.mxu3 %v466_v45  ;;  %v548_v45 = vld [vmem:[%s1128_s10 + $0x88] sm:$0xff] }
 0x213   :  { %518 = vmatpush.msra.mxu3 %v464_v47  ;;  %v469_v47 = vld [vmem:[%s1127_s9] sm:$0x3] }
 0x215   :  { %v740_v53 = vpop.eup %739  ;;  %519 = vmatpush.msra.mxu3 %v462_v49 }
 0x216   :  { %703 = vmatmul.msk.f32.vlgmr.msrb.gmra.mxu3 %vm144_vm2, %v736_v46  ;;  %704 = vmatmul.msk.f32.vlgmr.msra.gmra.mxu1 %vm144_vm2, %v740_v53  ;;  %v290_v54 = vsel %vm144_vm2, %v740_v53, 0.0  ;;  %v463_v46 = vld [vmem:[%s1126_s8 + $0x10] sm:$0xff] }
 0x217   :  { %291 = vadd.xlane.f32.xlu1 %v290_v54  ;;  %495 = vmatpush.msrb.mxu0 %v463_v46  ;;  %v547_v46 = vld [vmem:[%s1128_s10 + $0x80] sm:$0xff] }
 0x218   :  { %567 = vmatpush.msra.mxu1 %v546_v56 }
 0x219   :  { %496 = vmatpush.msrb.mxu0 %v461_v48  ;;  %v471_v48 = vperm.slane %v469_v47, 0 }
 0x21a   :  { %568 = vmatpush.msra.mxu1 %v545_v57 }
 0x21f   :  { %161 = vadd.xlane.f32.xlu1 %v160_v55 }
 0x273   :  { %v159_v8 = vpop.xlane.xlu0 %158 }
 0x27b   :  { %v289_v59 = vpop.xlane.xlu1 %288 }
 0x282   :  { %v188_v60 = vpop.f32.mrf.mxu3 }
 0x28a   :  { %v292_v61 = vpop.xlane.xlu1 %291 }
 0x28b   :  { %741 = vrcp.f32 %v292_v61  ;;  %v561_v61 = vld [vmem:[%s1128_s10 + $0xf0] sm:$0xff] }
 0x28c   :  { %743 = vrcp.f32 %v289_v59  ;;  %v562_v59 = vld [vmem:[%s1128_s10 + $0xf8] sm:$0xff] }
 0x28d   :  { %745 = vrcp.f32 %v159_v8  ;;  %590 = vmatpush.msrb.mxu2 %v562_v59 }
 0x28f   :  { %591 = vmatpush.msrb.mxu2 %v561_v61 }
 0x291   :  { %v214_v62 = vpop.f32.mrf.mxu3  ;;  %v742_v63 = vpop.eup %741 }
 0x292   :  { %v744_v2 = vpop.eup %743  ;;  %v162_v13 = vpop.xlane.xlu1 %161 }
 0x293   :  { %v344_v0 = vpop.f32.mrf.mxu1  ;;  %v746_v9 = vpop.eup %745  ;;  %747 = vrcp.f32 %v162_v13  ;;  %v729_v13 = vld [vmem:[%s1125_s7] ss:$0 sm:$0xff] }
 0x294   :  { %v348_v1 = vmul.f32 %v742_v63, %v344_v0  ;;  %v217_v10 = vmul.f32 %v746_v9, %v188_v60  ;;  %749 = vrcp.f32 %v791_v27  ;;  %v544_v60 = vld [vmem:[%s1128_s10 + $0x68] sm:$0xff]  ;;  %v542_v9 = vld [vmem:[%s1128_s10 + $0x58] sm:$0xff] }
 0x295   :  { %v560_v0 = vld [vmem:[%s1128_s10 + $0xe8] sm:$0xff]  ;;  %569 = vmatpush.msra.mxu1 %v544_v60 }
 0x296   :  { %353 = vrot.lane.b32.xlu1 %v348_v1, %s790_s20  ;;  %592 = vmatpush.msrb.mxu2 %v560_v0 }
 0x299   :  { %v318_v3 = vpop.f32.mrf.mxu3  ;;  %v748_v14 = vpop.eup %747 }
 0x29a   :  { %v347_v6 = vmul.f32 %v744_v2, %v318_v3  ;;  %v218_v15 = vmul.f32 %v748_v14, %v214_v62  ;;  %v750_v28 = vpop.eup %749  ;;  %v543_v2 = vld [vmem:[%s1128_s10 + $0x60] sm:$0xff]  ;;  %v541_v14 = vld [vmem:[%s1128_s10 + $0x50] sm:$0xff] }
 0x29b   :  { %v407_v29 = vmul.f32 32.0, %v750_v28  ;;  %vm411_vm3 = vweird.f32 %v750_v28  ;;  %570 = vmatpush.msra.mxu1 %v543_v2 }
 0x29c   :  { %351 = vrot.lane.b32.xlu2 %v347_v6, %s790_s20  ;;  %v559_v6 = vld [vmem:[%s1128_s10 + $0xe0] sm:$0xff] }
 0x29d   :  { %v408_v30 = vsub.f32 1.0, %v407_v29  ;;  %593 = vmatpush.msrb.mxu2 %v559_v6  ;;  %571 = vmatpush.msra.mxu1 %v542_v9  ;;  %v553_v29 = vld [vmem:[%s1128_s10 + $0xb0] sm:$0xff] }
 0x29f   :  { %v409_v31 = vmul.f32 %v750_v28, %v408_v30  ;;  %572 = vmatpush.msra.mxu1 %v541_v14 }
 0x2a1   :  { %v410_v32 = vadd.f32 %v750_v28, %v409_v31  ;;  %v535_v31 = vld [vmem:[%s1128_s10 + $0x20] sm:$0xff] }
 0x2a3   :  { %v945_v33 = vsel %vm411_vm3, %v750_v28, %v410_v32  ;;  %v536_v28 = vld [vmem:[%s1128_s10 + $0x28] sm:$0xff] }
 0x2f6   :  { %v352_v11 = vpop.permute.xlu2 %351 }
 0x2f7   :  { %v357_v12 = vsel %vm92_vm1, %v217_v10, %v352_v11  ;;  %v558_v11 = vld [vmem:[%s1128_s10 + $0xd8] sm:$0xff] }
 0x2f8   :  { %705 = vmatmul.msk.f32.vlgmr.msrb.gmra.mxu1 %vm58_vm0, %v357_v12  ;;  %594 = vmatpush.msrb.mxu2 %v558_v11 }
 0x308   :  { %v354_v16 = vpop.permute.xlu1 %353 }
 0x309   :  { %v358_v17 = vsel %vm92_vm1, %v218_v15, %v354_v16  ;;  %v557_v15 = vld [vmem:[%s1128_s10 + $0xd0] sm:$0xff] }
 0x30a   :  { %706 = vmatmul.msk.f32.gmra.mxu1 %vm58_vm0, %v358_v17  ;;  %v540_v17 = vld [vmem:[%s1128_s10 + $0x48] sm:$0xff]  ;;  %595 = vmatpush.msrb.mxu2 %v557_v15 }
 0x30b   :  { %573 = vmatpush.msra.mxu1 %v540_v17 }
 0x375   :  { %v390_v19 = vpop.f32.mrf.mxu1 }
 0x376   :  { %v391_v20 = vadd.f32 %v727_v18, %v390_v19  ;;  %v539_v19 = vld [vmem:[%s1128_s10 + $0x40] sm:$0xff] }
 0x377   :  { %574 = vmatpush.msra.mxu1 %v539_v19 }
 0x378   :  { %v396_v21 = vadd.f32 %v391_v20, %v885_v4  ;;  %v556_v20 = vld [vmem:[%s1128_s10 + $0xc8] sm:$0xff] }
 0x379   :  { %596 = vmatpush.msrb.mxu2 %v556_v20 }
 0x37a   :  { %v400_v22 = vsel %vm58_vm0, %v396_v21, 0.0 }
 0x37b   :  { %401 = vadd.xlane.f32.xlu2 %v400_v22  ;;  %v538_v22 = vld [vmem:[%s1128_s10 + $0x38] sm:$0xff] }
 0x37c   :  { %575 = vmatpush.msra.mxu1 %v538_v22 }
 0x387   :  { %v393_v23 = vpop.f32.mrf.mxu1 }
 0x388   :  { %v394_v24 = vadd.f32 %v727_v18, %v393_v23  ;;  %v555_v23 = vld [vmem:[%s1128_s10 + $0xc0] sm:$0xff] }
 0x389   :  { %597 = vmatpush.msrb.mxu2 %v555_v23 }
 0x38a   :  { %v397_v25 = vadd.f32 %v394_v24, %v892_v5 }
 0x38c   :  { %v403_v26 = vsel %vm58_vm0, %v397_v25, 0.0 }
 0x38d   :  { %404 = vadd.xlane.f32.xlu1 %v403_v26  ;;  %v554_v26 = vld [vmem:[%s1128_s10 + $0xb8] sm:$0xff] }
 0x38e   :  { %598 = vmatpush.msrb.mxu2 %v554_v26 }
 0x390   :  { %599 = vmatpush.msrb.mxu2 %v553_v29 }
 0x3ee   :  { %v402_v4 = vpop.xlane.xlu2 %401 }
 0x3ef   :  { %v413_v34 = vmul.f32 %v945_v33, %v402_v4  ;;  %v534_v4 = vld [vmem:[%s1128_s10 + $0x18] sm:$0xff] }
 0x3f1   :  { %v415_v35 = vsub.f32 %v396_v21, %v413_v34 }
 0x3f3   :  { %v417_v36 = vmul.f32 %v415_v35, %v415_v35 }
 0x3f5   :  { %v419_v5 = vsel %vm58_vm0, %v417_v36, 0.0 }
 0x3f6   :  { %420 = vadd.xlane.f32.xlu0 %v419_v5 }
 0x400   :  { %v405_v37 = vpop.xlane.xlu1 %404 }
 0x401   :  { %v414_v38 = vmul.f32 %v945_v33, %v405_v37 }
 0x403   :  { %v950_v39 = vsub.f32 %v397_v25, %v414_v38  ;;  %v537_v25 = vld [vmem:[%s1128_s10 + $0x30] sm:$0xff] }
 0x404   :  { %576 = vmatpush.msra.mxu1 %v537_v25  ;;  %v533_v38 = vld [vmem:[%s1128_s10 + $0x10] sm:$0xff] }
 0x405   :  { %v418_v40 = vmul.f32 %v950_v39, %v950_v39 }
 0x406   :  { %577 = vmatpush.msra.mxu1 %v536_v28 }
 0x407   :  { %v422_v41 = vsel %vm58_vm0, %v418_v40, 0.0  ;;  %v552_v40 = vld [vmem:[%s1128_s10 + $0xa8] sm:$0xff] }
 0x408   :  { %423 = vadd.xlane.f32.xlu0 %v422_v41  ;;  %578 = vmatpush.msra.mxu1 %v535_v31  ;;  %v551_v41 = vld [vmem:[%s1128_s10 + $0xa0] sm:$0xff] }
 0x409   :  { %600 = vmatpush.msrb.mxu2 %v552_v40 }
 0x40a   :  { %579 = vmatpush.msra.mxu1 %v534_v4 }
 0x40b   :  { %601 = vmatpush.msrb.mxu2 %v551_v41 }
 0x40c   :  { %580 = vmatpush.msra.mxu1 %v533_v38 }
 0x40d   :  { %602 = vmatpush.msrb.mxu2 %v550_v43 }
 0x40f   :  { %603 = vmatpush.msrb.mxu2 %v549_v44 }
 0x411   :  { %604 = vmatpush.msrb.mxu2 %v548_v45 }
 0x413   :  { %605 = vmatpush.msrb.mxu2 %v547_v46 }
 0x469   :  { %v421_v50 = vpop.xlane.xlu0 %420 }
 0x46a   :  { %v425_v51 = vmul.f32 %v421_v50, %v945_v33 }
 0x46c   :  { %v427_v52 = vadd.f32 1e-06, %v425_v51 }
 0x46e   :  { %751 = vrsqrt.f32 %v427_v52  ;;  %vm435_vm5 = vweird.f32 %v427_v52 }
 0x474   :  { %v752_v53 = vpop.eup %751 }
 0x475   :  { %v430_v54 = vmul.f32 %v752_v53, %v427_v52  ;;  %vm436_vm4 = vweird.f32 %v752_v53  ;;  %v472_v52 = vperm.slane %v469_v47, 1 }
 0x476   :  { %vm437_vm6 = vmor %vm435_vm5, %vm436_vm4 }
 0x477   :  { %v431_v55 = vmul.f32 %v752_v53, %v430_v54 }
 0x479   :  { %v432_v58 = vmul.f32 0.5, %v431_v55 }
 0x47b   :  { %v433_v62 = vsub.f32 1.5, %v432_v58  ;;  %v424_v63 = vpop.xlane.xlu0 %423 }
 0x47c   :  { %v426_v1 = vmul.f32 %v424_v63, %v945_v33 }
 0x47d   :  { %v434_v3 = vmul.f32 %v752_v53, %v433_v62  ;;  %v730_v62 = vld [vmem:[%s1129_s11] ss:$0 sm:$0xff] }
 0x47e   :  { %v428_v8 = vadd.f32 1e-06, %v426_v1 }
 0x47f   :  { %v438_v10 = vsel %vm437_vm6, %v752_v53, %v434_v3 }
 0x480   :  { %v449_v12 = vmul.f32 %v438_v10, %v415_v35  ;;  %753 = vrsqrt.f32 %v428_v8  ;;  %vm445_vm8 = vweird.f32 %v428_v8 }
 0x482   :  { %v454_v16 = vmul.f32 %v728_v7, %v449_v12 }
 0x484   :  { %v1026_v18 = vadd.f32 %v729_v13, %v454_v16 }
 0x486   :  { %v754_v21 = vpop.eup %753  ;;  %707 = vmatmul.msk.f32.vlgmr.msrb.gmra.mxu0 %vm58_vm0, %v1026_v18  ;;  %709 = vmatmul.msk.f32.vlgmr.msra.gmra.mxu3 %vm58_vm0, %v1026_v18 }
 0x487   :  { %v440_v24 = vmul.f32 %v754_v21, %v428_v8  ;;  %vm446_vm7 = vweird.f32 %v754_v21 }
 0x488   :  { %vm447_vm9 = vmor %vm445_vm8, %vm446_vm7 }
 0x489   :  { %v441_v27 = vmul.f32 %v754_v21, %v440_v24 }
 0x48b   :  { %v442_v30 = vmul.f32 0.5, %v441_v27 }
 0x48d   :  { %v443_v32 = vsub.f32 1.5, %v442_v30 }
 0x48f   :  { %v444_v34 = vmul.f32 %v754_v21, %v443_v32 }
 0x491   :  { %v448_v35 = vsel %vm447_vm9, %v754_v21, %v444_v34  ;;  %v731_v34 = vld [vmem:[%s1130_s12] ss:$0 sm:$0xff]  ;;  %s792_s12 = smov [#allocation2]  }
 0x492   :  { %v450_v36 = vmul.f32 %v448_v35, %v950_v39  ;;  %v532_v39 = vld [vmem:[%s1128_s10 + $0x8] sm:$0xff]  ;;  %s677_s19 = sshll.u32 %s792_s12, 4  ;;  %s678_s19 = int_to_ptr.vmem [resolvable:$true] %s677_s19 }
 0x493   :  { %581 = vmatpush.msra.mxu1 %v532_v39 }
 0x494   :  { %v455_v5 = vmul.f32 %v728_v7, %v450_v36 }
 0x495   :  { %582 = vmatpush.msra.mxu1 %v531_v42 }
 0x496   :  { %v460_v37 = vadd.f32 %v729_v13, %v455_v5 }
 0x498   :  { %708 = vmatmul.msk.f32.gmra.mxu0 %vm58_vm0, %v460_v37  ;;  %710 = vmatmul.msk.f32.gmra.mxu3 %vm58_vm0, %v460_v37 }
 0x503   :  { %v498_v49 = vpop.f32.mrf.mxu0 }
 0x504   :  { %v499_v50 = vadd.f32 %v498_v49, %v471_v48 }
 0x506   :  { %v527_v51 = vmax.f32 %v499_v50, 0.0 }
 0x508   :  { %583 = vmatmul.f32.vlgmr.msra.gmra.mxu1 %v527_v51 }
 0x509   :  { %v521_v53 = vpop.f32.mrf.mxu3 }
 0x50a   :  { %v522_v54 = vadd.f32 %v521_v53, %v472_v52 }
 0x50c   :  { %v528_v55 = vmax.f32 %v522_v54, 0.0 }
 0x50e   :  { %606 = vmatmul.f32.vlgmr.msrb.gmra.mxu2 %v528_v55 }
 0x515   :  { %v501_v56 = vpop.f32.mrf.mxu0 }
 0x516   :  { %v502_v57 = vadd.f32 %v501_v56, %v471_v48 }
 0x518   :  { %v529_v58 = vmax.f32 %v502_v57, 0.0 }
 0x51a   :  { %586 = vmatmul.f32.gmra.mxu1 %v529_v58 }
 0x51b   :  { %v524_v59 = vpop.f32.mrf.mxu3 }
 0x51c   :  { %v525_v60 = vadd.f32 %v524_v59, %v472_v52 }
 0x51e   :  { %v530_v61 = vmax.f32 %v525_v60, 0.0 }
 0x520   :  { %609 = vmatmul.f32.gmra.mxu2 %v530_v61 }
 0x585   :  { %v584_v63 = vpop.f32.mrf.mxu1 }
 0x586   :  { %v585_v0 = vadd.f32 %v730_v62, %v584_v63 }
 0x591   :  { %v607_v1 = vpop.f32.mrf.mxu2 }
 0x592   :  { %v608_v2 = vadd.f32 %v607_v1, %v585_v0 }
 0x594   :  { %v613_v3 = vadd.f32 %v608_v2, %v1026_v18 }
 0x596   :  { %v617_v6 = vsel %vm58_vm0, %v613_v3, 0.0 }
 0x597   :  { %618 = vadd.xlane.f32.xlu0 %v617_v6  ;;  %v587_v7 = vpop.f32.mrf.mxu1 }
 0x598   :  { %v588_v8 = vadd.f32 %v730_v62, %v587_v7 }
 0x5a3   :  { %v610_v9 = vpop.f32.mrf.mxu2 }
 0x5a4   :  { %v611_v10 = vadd.f32 %v610_v9, %v588_v8 }
 0x5a6   :  { %v614_v11 = vadd.f32 %v611_v10, %v460_v37  ;;  %v732_v37 = vld [vmem:[%s1131_s13] ss:$0 sm:$0xff]  ;;  %s679_s13 = sshll.u32 %s1132_s14, 4  ;;  %s680_s13 = int_to_ptr.hbm [resolvable:$true] %s679_s13 }
 0x5a8   :  { %v620_v12 = vsel %vm58_vm0, %v614_v11, 0.0 }
 0x5a9   :  { %621 = vadd.xlane.f32.xlu2 %v620_v12 }
 0x60a   :  { %v619_v13 = vpop.xlane.xlu0 %618 }
 0x60b   :  { %v623_v14 = vmul.f32 %v619_v13, %v945_v33 }
 0x60d   :  { %v625_v15 = vsub.f32 %v613_v3, %v623_v14 }
 0x60f   :  { %v627_v16 = vmul.f32 %v625_v15, %v625_v15 }
 0x611   :  { %v629_v17 = vsel %vm58_vm0, %v627_v16, 0.0 }
 0x612   :  { %630 = vadd.xlane.f32.xlu0 %v629_v17 }
 0x61c   :  { %v622_v18 = vpop.xlane.xlu2 %621 }
 0x61d   :  { %v624_v19 = vmul.f32 %v622_v18, %v945_v33 }
 0x61f   :  { %v626_v20 = vsub.f32 %v614_v11, %v624_v19 }
 0x621   :  { %v628_v21 = vmul.f32 %v626_v20, %v626_v20 }
 0x623   :  { %v632_v22 = vsel %vm58_vm0, %v628_v21, 0.0 }
 0x624   :  { %633 = vadd.xlane.f32.xlu2 %v632_v22 }
 0x685   :  { %v631_v23 = vpop.xlane.xlu0 %630 }
 0x686   :  { %v635_v24 = vmul.f32 %v631_v23, %v945_v33 }
 0x688   :  { %v637_v25 = vadd.f32 1e-06, %v635_v24 }
 0x68a   :  { %755 = vrsqrt.f32 %v637_v25  ;;  %vm645_vm11 = vweird.f32 %v637_v25 }
 0x690   :  { %v756_v26 = vpop.eup %755 }
 0x691   :  { %v640_v27 = vmul.f32 %v756_v26, %v637_v25  ;;  %vm646_vm10 = vweird.f32 %v756_v26 }
 0x692   :  { %vm647_vm12 = vmor %vm645_vm11, %vm646_vm10 }
 0x693   :  { %v641_v28 = vmul.f32 %v756_v26, %v640_v27 }
 0x695   :  { %v642_v29 = vmul.f32 0.5, %v641_v28 }
 0x697   :  { %v643_v30 = vsub.f32 1.5, %v642_v29  ;;  %v634_v31 = vpop.xlane.xlu2 %633 }
 0x698   :  { %v636_v32 = vmul.f32 %v634_v31, %v945_v33 }
 0x699   :  { %v644_v4 = vmul.f32 %v756_v26, %v643_v30 }
 0x69a   :  { %v638_v35 = vadd.f32 1e-06, %v636_v32 }
 0x69b   :  { %v648_v36 = vsel %vm647_vm12, %v756_v26, %v644_v4 }
 0x69c   :  { %v659_v5 = vmul.f32 %v648_v36, %v625_v15  ;;  %757 = vrsqrt.f32 %v638_v35  ;;  %vm655_vm14 = vweird.f32 %v638_v35 }
 0x69e   :  { %v664_v38 = vmul.f32 %v731_v34, %v659_v5 }
 0x6a0   :  { %v669_v40 = vadd.f32 %v732_v37, %v664_v38 }
 0x6a2   :  { %v758_v39 = vpop.eup %757  ;;  %671 = vst.msk [vmem:[#allocation2] sm:$0xff] %vm58_vm0, %v669_v40 }
 0x6a3   :  { %v650_v33 = vmul.f32 %v758_v39, %v638_v35  ;;  %vm656_vm13 = vweird.f32 %v758_v39 }
 0x6a4   :  { %vm657_vm15 = vmor %vm655_vm14, %vm656_vm13 }
 0x6a5   :  { %v651_v41 = vmul.f32 %v758_v39, %v650_v33 }
 0x6a7   :  { %v652_v42 = vmul.f32 0.5, %v651_v41 }
 0x6a9   :  { %v653_v43 = vsub.f32 1.5, %v652_v42 }
 0x6ab   :  { %v654_v44 = vmul.f32 %v758_v39, %v653_v43 }
 0x6ad   :  { %v658_v45 = vsel %vm657_vm15, %v758_v39, %v654_v44 }
 0x6ae   :  { %v660_v46 = vmul.f32 %v658_v45, %v626_v20 }
 0x6b0   :  { %v665_v47 = vmul.f32 %v731_v34, %v660_v46 }
 0x6b2   :  { %v670_v48 = vadd.f32 %v732_v37, %v665_v47 }
 0x6b4   :  { %672 = vst.msk [vmem:[#allocation2 + $0x8] sm:$0xff] %vm58_vm0, %v670_v48 }
 0x6b5   :  { %685 = dma.vmem_to_hbm [thread:$0]  %s678_s19, 256, %s680_s13, [#allocation3], %s793_s21, %s793_s21, %s794_s22  }
 0x6b6   :  { %783 = dma.done.wait [#allocation3], 256  }
 0x6b7   :  { %784 = vsyncadd [#allocation3], 4294967040 }
 0x6b8   :  { %690 = vsyncpa [#allocation3], 1 }

// kernel: tpu_custom_call.1
= control target key start
LH: loop header
LB: loop body
LE: loop exit
PB: predicated region body
PF: predicated region fallthrough
CT: control target
= control target key end

     0   :  { %s1118_s0 = inlined_call_operand.vmem [shape: f32[2,8,32], index: 0, kind: input, shape index: {}]   ;;  %s1119_s1 = inlined_call_operand.vmem [shape: f32[8,8], index: 1, kind: input, shape index: {}]   ;;  %s1120_s2 = inlined_call_operand.vmem [shape: f32[32,96], index: 2, kind: input, shape index: {}]   ;;  %s1121_s3 = inlined_call_operand.vmem [shape: f32[1,96], index: 3, kind: input, shape index: {}]   ;;  %s1122_s4 = inlined_call_operand.vmem [shape: f32[32,32], index: 4, kind: input, shape index: {}]   ;;  %s1123_s5 = inlined_call_operand.vmem [shape: f32[1,32], index: 5, kind: input, shape index: {}]   ;;  %s1124_s6 = inlined_call_operand.vmem [shape: f32[1,32], index: 6, kind: input, shape index: {}]   ;;  %s1125_s7 = inlined_call_operand.vmem [shape: f32[1,32], index: 7, kind: input, shape index: {}]   ;;  %s1126_s8 = inlined_call_operand.vmem [shape: f32[32,256], index: 8, kind: input, shape index: {}]   ;;  %s1127_s9 = inlined_call_operand.vmem [shape: f32[1,256], index: 9, kind: input, shape index: {}]   ;;  %s1128_s10 = inlined_call_operand.vmem [shape: f32[256,32], index: 10, kind: input, shape index: {}]   ;;  %s1129_s11 = inlined_call_operand.vmem [shape: f32[1,32], index: 11, kind: input, shape index: {}]   ;;  %s1130_s12 = inlined_call_operand.vmem [shape: f32[1,32], index: 12, kind: input, shape index: {}]   ;;  %s1131_s13 = inlined_call_operand.vmem [shape: f32[1,32], index: 13, kind: input, shape index: {}]   ;;  %s1132_s14 = inlined_call_operand.hbm [shape: f32[2,8,32], index: 14, kind: output, shape index: {}]  }
   0x1   :  { %v53_v0 = vld [vmem:[%s1120_s2 + $0x18] sm:$0xff]  ;;  %v52_v1 = vld [vmem:[%s1120_s2 + $0x10] sm:$0xff]  ;;  %v51_v2 = vld [vmem:[%s1120_s2 + $0x8] sm:$0xff] }
   0x2   :  { %77 = vmatpush.msra.mxu0 %v53_v0  ;;  %v50_v3 = vld [vmem:[%s1120_s2] sm:$0xff] }
   0x4   :  { %78 = vmatpush.msra.mxu0 %v52_v1 }
   0x5   :  { %19 = vsyncpa [#allocation3], 0  ;;  %v885_v4 = vld [vmem:[%s1118_s0] sm:$0xff]  ;;  %vm58_vm0 = vcmask 261120   ;;  %v892_v5 = vld [vmem:[%s1118_s0 + $0x8] sm:$0xff]  ;;  %s785_s26 = smov 80  }
   0x6   :  { %79 = vmatpush.msra.mxu0 %v51_v2  ;;  %v726_v6 = vld [vmem:[%s1121_s3] ss:$0 sm:$0xff]  ;;  %s786_s27 = smov 96   ;;  %s787_s28 = smov 112   ;;  %vm92_vm1 = vcmask 130048   ;;  %vm144_vm2 = vcmask 64512  }
   0x7   :  { %s788_s0 = smov 64   ;;  %v88_v21 = vld [vmem:[%s1119_s1] sm:$0xff]  ;;  %s789_s30 = smov 48   ;;  %v362_v56 = vld [vmem:[%s1122_s4 + $0x18] sm:$0xff]  ;;  %v361_v57 = vld [vmem:[%s1122_s4 + $0x10] sm:$0xff] }
   0x8   :  { %80 = vmatpush.msra.mxu0 %v50_v3  ;;  %v360_v58 = vld [vmem:[%s1122_s4 + $0x8] sm:$0xff]  ;;  %s790_s20 = smov 16   ;;  %s793_s21 = smov 128  }
   0x9   :  { %691 = vmatmul.msk.f32.vlgmr.msra.gmra.mxu0 %vm58_vm0, %v885_v4  ;;  %s794_s22 = smov 8  }
  0x11   :  { %692 = vmatmul.msk.f32.gmra.mxu0 %vm58_vm0, %v892_v5 }
  0x86   :  { %v82_v7 = vpop.f32.mrf.mxu0 }
  0x87   :  { %v83_v8 = vadd.f32 %v726_v6, %v82_v7  ;;  %v359_v7 = vld [vmem:[%s1122_s4] sm:$0xff] }
  0x89   :  { %221 = vrot.lane.b32.xlu1 %v83_v8, %s785_s26  ;;  %90 = vrot.lane.b32.xlu0 %v83_v8, %s786_s27 }
  0x8e   :  { %v85_v9 = vpop.f32.mrf.mxu0 }
  0x8f   :  { %v86_v10 = vadd.f32 %v726_v6, %v85_v9 }
  0x91   :  { %249 = vrot.lane.b32.xlu2 %v86_v10, %s785_s26  ;;  %219 = vrot.lane.b32.xlu1 %v83_v8, %s787_s28  ;;  %v721_v11 = vpack.i.bf16 %v86_v10, %v83_v8 }
  0x92   :  { %118 = vrot.lane.b32.xlu0 %v86_v10, %s786_s27 }
  0x99   :  { %247 = vrot.lane.b32.xlu2 %v86_v10, %s787_s28 }
  0xa1   :  { %722 = vrot.lane.b32.xlu2 %v721_v11, %s788_s0 }
  0xeb   :  { %v250_v12 = vpop.permute.xlu2 %249 }
  0xec   :  { %701 = vmatpush.xpose.msk.msra.mxu2 %vm92_vm1, %v250_v12 }
  0xf3   :  { %v248_v13 = vpop.permute.xlu2 %247 }
  0xf4   :  { %702 = vmatmul.msk.f32.vlgmr.msra.gmra.mxu2 %vm92_vm1, %v248_v13 }
  0xfb   :  { %v222_v14 = vpop.permute.xlu1 %221  ;;  %v91_v15 = vpop.permute.xlu0 %90 }
  0xfc   :  { %693 = vmatpush.xpose.msk.msrb.mxu0 %vm92_vm1, %v91_v15  ;;  %v723_v16 = vpop.permute.xlu2 %722 }
  0xfd   :  { %v724_v18 = vunpack.i.l.bf16 %v723_v16  ;;  %v725_v19 = vunpack.i.h.bf16 %v723_v16 }
  0xff   :  { %694 = vmatmul.msk.f32.vlgmr.msrb.gmra.mxu0 %vm92_vm1, %v83_v8 }
 0x100   :  { %699 = vmatpush.xpose.msk.msra.mxu0 %vm92_vm1, %v222_v14 }
 0x103   :  { %v220_v20 = vpop.permute.xlu1 %219 }
 0x104   :  { %v119_v17 = vpop.permute.xlu0 %118 }
 0x105   :  { %695 = vmatpush.xpose.msk.msra.mxu3 %vm92_vm1, %v119_v17 }
 0x107   :  { %700 = vmatmul.msk.f32.vlgmr.msra.gmra.mxu0 %vm92_vm1, %v220_v20 }
 0x108   :  { %696 = vmatmul.msk.f32.vlgmr.msra.gmra.mxu3 %vm92_vm1, %v86_v10 }
 0x109   :  { %186 = vmatpush.msrb.mxu3 %v724_v18  ;;  %v727_v18 = vld [vmem:[%s1123_s5] ss:$0 sm:$0xff] }
 0x10b   :  { %212 = vmatpush.msra.mxu3 %v725_v19 }
 0x177   :  { %v272_v31 = vpop.f32.mrf.mxu2 }
 0x178   :  { %v273_v32 = vadd.f32 %v272_v31, %v88_v21 }
 0x17a   :  { %v278_v33 = vsel %vm144_vm2, %v273_v32, -inf }
 0x17c   :  { %v114_v22 = vpop.f32.mrf.mxu0 }
 0x17d   :  { %v115_v23 = vadd.f32 %v114_v22, %v88_v21 }
 0x17f   :  { %v145_v24 = vsel %vm144_vm2, %v115_v23, -inf }
 0x180   :  { %146 = vmax.xlane.f32.xlu0 %v145_v24 }
 0x184   :  { %v244_v25 = vpop.f32.mrf.mxu0 }
 0x185   :  { %v245_v26 = vadd.f32 %v244_v25, %v88_v21 }
 0x187   :  { %v275_v27 = vsel %vm144_vm2, %v245_v26, -inf }
 0x188   :  { %276 = vmax.xlane.f32.xlu2 %v275_v27  ;;  %v791_v27 = vmov 32.0  }
 0x18b   :  { %v141_v28 = vpop.f32.mrf.mxu3 }
 0x18c   :  { %v142_v29 = vadd.f32 %v141_v28, %v88_v21 }
 0x18e   :  { %v148_v30 = vsel %vm144_vm2, %v142_v29, -inf }
 0x18f   :  { %149 = vmax.xlane.f32.xlu1 %v148_v30 }
 0x194   :  { %295 = vrot.lane.b32.xlu0 %v83_v8, %s789_s30 }
 0x197   :  { %279 = vmax.xlane.f32.xlu1 %v278_v33 }
 0x1a0   :  { %321 = vrot.lane.b32.xlu2 %v86_v10, %s789_s30 }
 0x1f3   :  { %v147_v34 = vpop.xlane.xlu0 %146 }
 0x1f4   :  { %v151_v35 = vsub.f32 %v115_v23, %v147_v34 }
 0x1f6   :  { %v153_v36 = vmul.f32 1.442695, %v151_v35 }
 0x1f8   :  { %733 = vpow2.f32 %v153_v36 }
 0x1fb   :  { %v277_v37 = vpop.xlane.xlu2 %276 }
 0x1fc   :  { %v281_v38 = vsub.f32 %v245_v26, %v277_v37 }
 0x1fe   :  { %v734_v39 = vpop.eup %733  ;;  %v283_v40 = vmul.f32 1.442695, %v281_v38 }
 0x1ff   :  { %697 = vmatmul.msk.f32.vlgmr.msrb.gmra.mxu3 %vm144_vm2, %v734_v39  ;;  %v157_v41 = vsel %vm144_vm2, %v734_v39, 0.0 }
 0x200   :  { %735 = vpow2.f32 %v283_v40  ;;  %158 = vadd.xlane.f32.xlu0 %v157_v41 }
 0x202   :  { %v150_v42 = vpop.xlane.xlu1 %149 }
 0x203   :  { %v152_v43 = vsub.f32 %v142_v29, %v150_v42  ;;  %v322_v44 = vpop.permute.xlu2 %321  ;;  %v467_v42 = vld [vmem:[%s1126_s8 + $0x30] sm:$0xff] }
 0x204   :  { %342 = vmatpush.msra.mxu1 %v322_v44  ;;  %493 = vmatpush.msrb.mxu0 %v467_v42  ;;  %v465_v44 = vld [vmem:[%s1126_s8 + $0x20] sm:$0xff] }
 0x205   :  { %v155_v45 = vmul.f32 1.442695, %v152_v43  ;;  %v468_v43 = vld [vmem:[%s1126_s8 + $0x38] sm:$0xff]  ;;  %v531_v42 = vld [vmem:[%s1128_s10] sm:$0xff] }
 0x206   :  { %v736_v46 = vpop.eup %735  ;;  %v296_v47 = vpop.permute.xlu0 %295  ;;  %385 = vmatpush.msrb.mxu1 %v362_v56  ;;  %494 = vmatpush.msrb.mxu0 %v465_v44  ;;  %v546_v56 = vld [vmem:[%s1128_s10 + $0x78] sm:$0xff]  ;;  %v549_v44 = vld [vmem:[%s1128_s10 + $0x90] sm:$0xff] }
 0x207   :  { %737 = vpow2.f32 %v155_v45  ;;  %316 = vmatpush.msrb.mxu3 %v296_v47  ;;  %v287_v48 = vsel %vm144_vm2, %v736_v46, 0.0  ;;  %v466_v45 = vld [vmem:[%s1126_s8 + $0x28] sm:$0xff]  ;;  %v464_v47 = vld [vmem:[%s1126_s8 + $0x18] sm:$0xff] }
 0x208   :  { %288 = vadd.xlane.f32.xlu1 %v287_v48  ;;  %386 = vmatpush.msrb.mxu1 %v361_v57  ;;  %v461_v48 = vld [vmem:[%s1126_s8] sm:$0xff]  ;;  %v545_v57 = vld [vmem:[%s1128_s10 + $0x70] sm:$0xff] }
 0x20a   :  { %v280_v49 = vpop.xlane.xlu1 %279  ;;  %387 = vmatpush.msrb.mxu1 %v360_v58 }
 0x20b   :  { %v282_v50 = vsub.f32 %v273_v32, %v280_v49  ;;  %v462_v49 = vld [vmem:[%s1126_s8 + $0x8] sm:$0xff] }
 0x20c   :  { %388 = vmatpush.msrb.mxu1 %v359_v7  ;;  %v728_v7 = vld [vmem:[%s1124_s6] ss:$0 sm:$0xff] }
 0x20d   :  { %v738_v51 = vpop.eup %737  ;;  %v285_v52 = vmul.f32 1.442695, %v282_v50 }
 0x20e   :  { %698 = vmatmul.msk.f32.vlgmr.msra.gmra.mxu3 %vm144_vm2, %v738_v51  ;;  %v160_v55 = vsel %vm144_vm2, %v738_v51, 0.0 }
 0x20f   :  { %739 = vpow2.f32 %v285_v52  ;;  %516 = vmatpush.msra.mxu3 %v468_v43  ;;  %v550_v43 = vld [vmem:[%s1128_s10 + $0x98] sm:$0xff] }
 0x211   :  { %517 = vmatpush.msra.mxu3 %v466_v45  ;;  %v548_v45 = vld [vmem:[%s1128_s10 + $0x88] sm:$0xff] }
 0x213   :  { %518 = vmatpush.msra.mxu3 %v464_v47  ;;  %v469_v47 = vld [vmem:[%s1127_s9] sm:$0x3] }
 0x215   :  { %v740_v53 = vpop.eup %739  ;;  %519 = vmatpush.msra.mxu3 %v462_v49 }
 0x216   :  { %703 = vmatmul.msk.f32.vlgmr.msrb.gmra.mxu3 %vm144_vm2, %v736_v46  ;;  %704 = vmatmul.msk.f32.vlgmr.msra.gmra.mxu1 %vm144_vm2, %v740_v53  ;;  %v290_v54 = vsel %vm144_vm2, %v740_v53, 0.0  ;;  %v463_v46 = vld [vmem:[%s1126_s8 + $0x10] sm:$0xff] }
 0x217   :  { %291 = vadd.xlane.f32.xlu1 %v290_v54  ;;  %495 = vmatpush.msrb.mxu0 %v463_v46  ;;  %v547_v46 = vld [vmem:[%s1128_s10 + $0x80] sm:$0xff] }
 0x218   :  { %567 = vmatpush.msra.mxu1 %v546_v56 }
 0x219   :  { %496 = vmatpush.msrb.mxu0 %v461_v48  ;;  %v471_v48 = vperm.slane %v469_v47, 0 }
 0x21a   :  { %568 = vmatpush.msra.mxu1 %v545_v57 }
 0x21f   :  { %161 = vadd.xlane.f32.xlu1 %v160_v55 }
 0x273   :  { %v159_v8 = vpop.xlane.xlu0 %158 }
 0x27b   :  { %v289_v59 = vpop.xlane.xlu1 %288 }
 0x282   :  { %v188_v60 = vpop.f32.mrf.mxu3 }
 0x28a   :  { %v292_v61 = vpop.xlane.xlu1 %291 }
 0x28b   :  { %741 = vrcp.f32 %v292_v61  ;;  %v561_v61 = vld [vmem:[%s1128_s10 + $0xf0] sm:$0xff] }
 0x28c   :  { %743 = vrcp.f32 %v289_v59  ;;  %v562_v59 = vld [vmem:[%s1128_s10 + $0xf8] sm:$0xff] }
 0x28d   :  { %745 = vrcp.f32 %v159_v8  ;;  %590 = vmatpush.msrb.mxu2 %v562_v59 }
 0x28f   :  { %591 = vmatpush.msrb.mxu2 %v561_v61 }
 0x291   :  { %v214_v62 = vpop.f32.mrf.mxu3  ;;  %v742_v63 = vpop.eup %741 }
 0x292   :  { %v744_v2 = vpop.eup %743  ;;  %v162_v13 = vpop.xlane.xlu1 %161 }
 0x293   :  { %v344_v0 = vpop.f32.mrf.mxu1  ;;  %v746_v9 = vpop.eup %745  ;;  %747 = vrcp.f32 %v162_v13  ;;  %v729_v13 = vld [vmem:[%s1125_s7] ss:$0 sm:$0xff] }
 0x294   :  { %v348_v1 = vmul.f32 %v742_v63, %v344_v0  ;;  %v217_v10 = vmul.f32 %v746_v9, %v188_v60  ;;  %749 = vrcp.f32 %v791_v27  ;;  %v544_v60 = vld [vmem:[%s1128_s10 + $0x68] sm:$0xff]  ;;  %v542_v9 = vld [vmem:[%s1128_s10 + $0x58] sm:$0xff] }
 0x295   :  { %v560_v0 = vld [vmem:[%s1128_s10 + $0xe8] sm:$0xff]  ;;  %569 = vmatpush.msra.mxu1 %v544_v60 }
 0x296   :  { %353 = vrot.lane.b32.xlu1 %v348_v1, %s790_s20  ;;  %592 = vmatpush.msrb.mxu2 %v560_v0 }
 0x299   :  { %v318_v3 = vpop.f32.mrf.mxu3  ;;  %v748_v14 = vpop.eup %747 }
 0x29a   :  { %v347_v6 = vmul.f32 %v744_v2, %v318_v3  ;;  %v218_v15 = vmul.f32 %v748_v14, %v214_v62  ;;  %v750_v28 = vpop.eup %749  ;;  %v543_v2 = vld [vmem:[%s1128_s10 + $0x60] sm:$0xff]  ;;  %v541_v14 = vld [vmem:[%s1128_s10 + $0x50] sm:$0xff] }
 0x29b   :  { %v407_v29 = vmul.f32 32.0, %v750_v28  ;;  %vm411_vm3 = vweird.f32 %v750_v28  ;;  %570 = vmatpush.msra.mxu1 %v543_v2 }
 0x29c   :  { %351 = vrot.lane.b32.xlu2 %v347_v6, %s790_s20  ;;  %v559_v6 = vld [vmem:[%s1128_s10 + $0xe0] sm:$0xff] }
 0x29d   :  { %v408_v30 = vsub.f32 1.0, %v407_v29  ;;  %593 = vmatpush.msrb.mxu2 %v559_v6  ;;  %571 = vmatpush.msra.mxu1 %v542_v9  ;;  %v553_v29 = vld [vmem:[%s1128_s10 + $0xb0] sm:$0xff] }
 0x29f   :  { %v409_v31 = vmul.f32 %v750_v28, %v408_v30  ;;  %572 = vmatpush.msra.mxu1 %v541_v14 }
 0x2a1   :  { %v410_v32 = vadd.f32 %v750_v28, %v409_v31  ;;  %v535_v31 = vld [vmem:[%s1128_s10 + $0x20] sm:$0xff] }
 0x2a3   :  { %v945_v33 = vsel %vm411_vm3, %v750_v28, %v410_v32  ;;  %v536_v28 = vld [vmem:[%s1128_s10 + $0x28] sm:$0xff] }
 0x2f6   :  { %v352_v11 = vpop.permute.xlu2 %351 }
 0x2f7   :  { %v357_v12 = vsel %vm92_vm1, %v217_v10, %v352_v11  ;;  %v558_v11 = vld [vmem:[%s1128_s10 + $0xd8] sm:$0xff] }
 0x2f8   :  { %705 = vmatmul.msk.f32.vlgmr.msrb.gmra.mxu1 %vm58_vm0, %v357_v12  ;;  %594 = vmatpush.msrb.mxu2 %v558_v11 }
 0x308   :  { %v354_v16 = vpop.permute.xlu1 %353 }
 0x309   :  { %v358_v17 = vsel %vm92_vm1, %v218_v15, %v354_v16  ;;  %v557_v15 = vld [vmem:[%s1128_s10 + $0xd0] sm:$0xff] }
 0x30a   :  { %706 = vmatmul.msk.f32.gmra.mxu1 %vm58_vm0, %v358_v17  ;;  %v540_v17 = vld [vmem:[%s1128_s10 + $0x48] sm:$0xff]  ;;  %595 = vmatpush.msrb.mxu2 %v557_v15 }
 0x30b   :  { %573 = vmatpush.msra.mxu1 %v540_v17 }
 0x375   :  { %v390_v19 = vpop.f32.mrf.mxu1 }
 0x376   :  { %v391_v20 = vadd.f32 %v727_v18, %v390_v19  ;;  %v539_v19 = vld [vmem:[%s1128_s10 + $0x40] sm:$0xff] }
 0x377   :  { %574 = vmatpush.msra.mxu1 %v539_v19 }
 0x378   :  { %v396_v21 = vadd.f32 %v391_v20, %v885_v4  ;;  %v556_v20 = vld [vmem:[%s1128_s10 + $0xc8] sm:$0xff] }
 0x379   :  { %596 = vmatpush.msrb.mxu2 %v556_v20 }
 0x37a   :  { %v400_v22 = vsel %vm58_vm0, %v396_v21, 0.0 }
 0x37b   :  { %401 = vadd.xlane.f32.xlu2 %v400_v22  ;;  %v538_v22 = vld [vmem:[%s1128_s10 + $0x38] sm:$0xff] }
 0x37c   :  { %575 = vmatpush.msra.mxu1 %v538_v22 }
 0x387   :  { %v393_v23 = vpop.f32.mrf.mxu1 }
 0x388   :  { %v394_v24 = vadd.f32 %v727_v18, %v393_v23  ;;  %v555_v23 = vld [vmem:[%s1128_s10 + $0xc0] sm:$0xff] }
 0x389   :  { %597 = vmatpush.msrb.mxu2 %v555_v23 }
 0x38a   :  { %v397_v25 = vadd.f32 %v394_v24, %v892_v5 }
 0x38c   :  { %v403_v26 = vsel %vm58_vm0, %v397_v25, 0.0 }
 0x38d   :  { %404 = vadd.xlane.f32.xlu1 %v403_v26  ;;  %v554_v26 = vld [vmem:[%s1128_s10 + $0xb8] sm:$0xff] }
 0x38e   :  { %598 = vmatpush.msrb.mxu2 %v554_v26 }
 0x390   :  { %599 = vmatpush.msrb.mxu2 %v553_v29 }
 0x3ee   :  { %v402_v4 = vpop.xlane.xlu2 %401 }
 0x3ef   :  { %v413_v34 = vmul.f32 %v945_v33, %v402_v4  ;;  %v534_v4 = vld [vmem:[%s1128_s10 + $0x18] sm:$0xff] }
 0x3f1   :  { %v415_v35 = vsub.f32 %v396_v21, %v413_v34 }
 0x3f3   :  { %v417_v36 = vmul.f32 %v415_v35, %v415_v35 }
 0x3f5   :  { %v419_v5 = vsel %vm58_vm0, %v417_v36, 0.0 }
 0x3f6   :  { %420 = vadd.xlane.f32.xlu0 %v419_v5 }
 0x400   :  { %v405_v37 = vpop.xlane.xlu1 %404 }
 0x401   :  { %v414_v38 = vmul.f32 %v945_v33, %v405_v37 }
 0x403   :  { %v950_v39 = vsub.f32 %v397_v25, %v414_v38  ;;  %v537_v25 = vld [vmem:[%s1128_s10 + $0x30] sm:$0xff] }
 0x404   :  { %576 = vmatpush.msra.mxu1 %v537_v25  ;;  %v533_v38 = vld [vmem:[%s1128_s10 + $0x10] sm:$0xff] }
 0x405   :  { %v418_v40 = vmul.f32 %v950_v39, %v950_v39 }
 0x406   :  { %577 = vmatpush.msra.mxu1 %v536_v28 }
 0x407   :  { %v422_v41 = vsel %vm58_vm0, %v418_v40, 0.0  ;;  %v552_v40 = vld [vmem:[%s1128_s10 + $0xa8] sm:$0xff] }
 0x408   :  { %423 = vadd.xlane.f32.xlu0 %v422_v41  ;;  %578 = vmatpush.msra.mxu1 %v535_v31  ;;  %v551_v41 = vld [vmem:[%s1128_s10 + $0xa0] sm:$0xff] }
 0x409   :  { %600 = vmatpush.msrb.mxu2 %v552_v40 }
 0x40a   :  { %579 = vmatpush.msra.mxu1 %v534_v4 }
 0x40b   :  { %601 = vmatpush.msrb.mxu2 %v551_v41 }
 0x40c   :  { %580 = vmatpush.msra.mxu1 %v533_v38 }
 0x40d   :  { %602 = vmatpush.msrb.mxu2 %v550_v43 }
 0x40f   :  { %603 = vmatpush.msrb.mxu2 %v549_v44 }
 0x411   :  { %604 = vmatpush.msrb.mxu2 %v548_v45 }
 0x413   :  { %605 = vmatpush.msrb.mxu2 %v547_v46 }
 0x469   :  { %v421_v50 = vpop.xlane.xlu0 %420 }
 0x46a   :  { %v425_v51 = vmul.f32 %v421_v50, %v945_v33 }
 0x46c   :  { %v427_v52 = vadd.f32 1e-06, %v425_v51 }
 0x46e   :  { %751 = vrsqrt.f32 %v427_v52  ;;  %vm435_vm5 = vweird.f32 %v427_v52 }
 0x474   :  { %v752_v53 = vpop.eup %751 }
 0x475   :  { %v430_v54 = vmul.f32 %v752_v53, %v427_v52  ;;  %vm436_vm4 = vweird.f32 %v752_v53  ;;  %v472_v52 = vperm.slane %v469_v47, 1 }
 0x476   :  { %vm437_vm6 = vmor %vm435_vm5, %vm436_vm4 }
 0x477   :  { %v431_v55 = vmul.f32 %v752_v53, %v430_v54 }
 0x479   :  { %v432_v58 = vmul.f32 0.5, %v431_v55 }
 0x47b   :  { %v433_v62 = vsub.f32 1.5, %v432_v58  ;;  %v424_v63 = vpop.xlane.xlu0 %423 }
 0x47c   :  { %v426_v1 = vmul.f32 %v424_v63, %v945_v33 }
 0x47d   :  { %v434_v3 = vmul.f32 %v752_v53, %v433_v62  ;;  %v730_v62 = vld [vmem:[%s1129_s11] ss:$0 sm:$0xff] }
 0x47e   :  { %v428_v8 = vadd.f32 1e-06, %v426_v1 }
 0x47f   :  { %v438_v10 = vsel %vm437_vm6, %v752_v53, %v434_v3 }
 0x480   :  { %v449_v12 = vmul.f32 %v438_v10, %v415_v35  ;;  %753 = vrsqrt.f32 %v428_v8  ;;  %vm445_vm8 = vweird.f32 %v428_v8 }
 0x482   :  { %v454_v16 = vmul.f32 %v728_v7, %v449_v12 }
 0x484   :  { %v1026_v18 = vadd.f32 %v729_v13, %v454_v16 }
 0x486   :  { %v754_v21 = vpop.eup %753  ;;  %707 = vmatmul.msk.f32.vlgmr.msrb.gmra.mxu0 %vm58_vm0, %v1026_v18  ;;  %709 = vmatmul.msk.f32.vlgmr.msra.gmra.mxu3 %vm58_vm0, %v1026_v18 }
 0x487   :  { %v440_v24 = vmul.f32 %v754_v21, %v428_v8  ;;  %vm446_vm7 = vweird.f32 %v754_v21 }
 0x488   :  { %vm447_vm9 = vmor %vm445_vm8, %vm446_vm7 }
 0x489   :  { %v441_v27 = vmul.f32 %v754_v21, %v440_v24 }
 0x48b   :  { %v442_v30 = vmul.f32 0.5, %v441_v27 }
 0x48d   :  { %v443_v32 = vsub.f32 1.5, %v442_v30 }
 0x48f   :  { %v444_v34 = vmul.f32 %v754_v21, %v443_v32 }
 0x491   :  { %v448_v35 = vsel %vm447_vm9, %v754_v21, %v444_v34  ;;  %v731_v34 = vld [vmem:[%s1130_s12] ss:$0 sm:$0xff]  ;;  %s792_s12 = smov [#allocation2]  }
 0x492   :  { %v450_v36 = vmul.f32 %v448_v35, %v950_v39  ;;  %v532_v39 = vld [vmem:[%s1128_s10 + $0x8] sm:$0xff]  ;;  %s677_s19 = sshll.u32 %s792_s12, 4  ;;  %s678_s19 = int_to_ptr.vmem [resolvable:$true] %s677_s19 }
 0x493   :  { %581 = vmatpush.msra.mxu1 %v532_v39 }
 0x494   :  { %v455_v5 = vmul.f32 %v728_v7, %v450_v36 }
 0x495   :  { %582 = vmatpush.msra.mxu1 %v531_v42 }
 0x496   :  { %v460_v37 = vadd.f32 %v729_v13, %v455_v5 }
 0x498   :  { %708 = vmatmul.msk.f32.gmra.mxu0 %vm58_vm0, %v460_v37  ;;  %710 = vmatmul.msk.f32.gmra.mxu3 %vm58_vm0, %v460_v37 }
 0x503   :  { %v498_v49 = vpop.f32.mrf.mxu0 }
 0x504   :  { %v499_v50 = vadd.f32 %v498_v49, %v471_v48 }
 0x506   :  { %v527_v51 = vmax.f32 %v499_v50, 0.0 }
 0x508   :  { %583 = vmatmul.f32.vlgmr.msra.gmra.mxu1 %v527_v51 }
 0x509   :  { %v521_v53 = vpop.f32.mrf.mxu3 }
 0x50a   :  { %v522_v54 = vadd.f32 %v521_v53, %v472_v52 }
 0x50c   :  { %v528_v55 = vmax.f32 %v522_v54, 0.0 }
 0x50e   :  { %606 = vmatmul.f32.vlgmr.msrb.gmra.mxu2 %v528_v55 }
 0x515   :  { %v501_v56 = vpop.f32.mrf.mxu0 }
 0x516   :  { %v502_v57 = vadd.f32 %v501_v56, %v471_v48 }
 0x518   :  { %v529_v58 = vmax.f32 %v502_v57, 0.0 }
 0x51a   :  { %586 = vmatmul.f32.gmra.mxu1 %v529_v58 }
 0x51b   :  { %v524_v59 = vpop.f32.mrf.mxu3 }
 0x51c   :  { %v525_v60 = vadd.f32 %v524_v59, %v472_v52 }
 0x51e   :  { %v530_v61 = vmax.f32 %v525_v60, 0.0 }
 0x520   :  { %609 = vmatmul.f32.gmra.mxu2 %v530_v61 }
 0x585   :  { %v584_v63 = vpop.f32.mrf.mxu1 }
 0x586   :  { %v585_v0 = vadd.f32 %v730_v62, %v584_v63 }
 0x591   :  { %v607_v1 = vpop.f32.mrf.mxu2 }
 0x592   :  { %v608_v2 = vadd.f32 %v607_v1, %v585_v0 }
 0x594   :  { %v613_v3 = vadd.f32 %v608_v2, %v1026_v18 }
 0x596   :  { %v617_v6 = vsel %vm58_vm0, %v613_v3, 0.0 }
 0x597   :  { %618 = vadd.xlane.f32.xlu0 %v617_v6  ;;  %v587_v7 = vpop.f32.mrf.mxu1 }
 0x598   :  { %v588_v8 = vadd.f32 %v730_v62, %v587_v7 }
 0x5a3   :  { %v610_v9 = vpop.f32.mrf.mxu2 }
 0x5a4   :  { %v611_v10 = vadd.f32 %v610_v9, %v588_v8 }
 0x5a6   :  { %v614_v11 = vadd.f32 %v611_v10, %v460_v37  ;;  %v732_v37 = vld [vmem:[%s1131_s13] ss:$0 sm:$0xff]  ;;  %s679_s13 = sshll.u32 %s1132_s14, 4  ;;  %s680_s13 = int_to_ptr.hbm [resolvable:$true] %s679_s13 }
 0x5a8   :  { %v620_v12 = vsel %vm58_vm0, %v614_v11, 0.0 }
 0x5a9   :  { %621 = vadd.xlane.f32.xlu2 %v620_v12 }
 0x60a   :  { %v619_v13 = vpop.xlane.xlu0 %618 }
 0x60b   :  { %v623_v14 = vmul.f32 %v619_v13, %v945_v33 }
 0x60d   :  { %v625_v15 = vsub.f32 %v613_v3, %v623_v14 }
 0x60f   :  { %v627_v16 = vmul.f32 %v625_v15, %v625_v15 }
 0x611   :  { %v629_v17 = vsel %vm58_vm0, %v627_v16, 0.0 }
 0x612   :  { %630 = vadd.xlane.f32.xlu0 %v629_v17 }
 0x61c   :  { %v622_v18 = vpop.xlane.xlu2 %621 }
 0x61d   :  { %v624_v19 = vmul.f32 %v622_v18, %v945_v33 }
 0x61f   :  { %v626_v20 = vsub.f32 %v614_v11, %v624_v19 }
 0x621   :  { %v628_v21 = vmul.f32 %v626_v20, %v626_v20 }
 0x623   :  { %v632_v22 = vsel %vm58_vm0, %v628_v21, 0.0 }
 0x624   :  { %633 = vadd.xlane.f32.xlu2 %v632_v22 }
 0x685   :  { %v631_v23 = vpop.xlane.xlu0 %630 }
 0x686   :  { %v635_v24 = vmul.f32 %v631_v23, %v945_v33 }
 0x688   :  { %v637_v25 = vadd.f32 1e-06, %v635_v24 }
 0x68a   :  { %755 = vrsqrt.f32 %v637_v25  ;;  %vm645_vm11 = vweird.f32 %v637_v25 }
 0x690   :  { %v756_v26 = vpop.eup %755 }
 0x691   :  { %v640_v27 = vmul.f32 %v756_v26, %v637_v25  ;;  %vm646_vm10 = vweird.f32 %v756_v26 }
 0x692   :  { %vm647_vm12 = vmor %vm645_vm11, %vm646_vm10 }
 0x693   :  { %v641_v28 = vmul.f32 %v756_v26, %v640_v27 }
 0x695   :  { %v642_v29 = vmul.f32 0.5, %v641_v28 }
 0x697   :  { %v643_v30 = vsub.f32 1.5, %v642_v29  ;;  %v634_v31 = vpop.xlane.xlu2 %633 }
 0x698   :  { %v636_v32 = vmul.f32 %v634_v31, %v945_v33 }
 0x699   :  { %v644_v4 = vmul.f32 %v756_v26, %v643_v30 }
 0x69a   :  { %v638_v35 = vadd.f32 1e-06, %v636_v32 }
 0x69b   :  { %v648_v36 = vsel %vm647_vm12, %v756_v26, %v644_v4 }
 0x69c   :  { %v659_v5 = vmul.f32 %v648_v36, %v625_v15  ;;  %757 = vrsqrt.f32 %v638_v35  ;;  %vm655_vm14 = vweird.f32 %v638_v35 }
 0x69e   :  { %v664_v38 = vmul.f32 %v731_v34, %v659_v5 }
 0x6a0   :  { %v669_v40 = vadd.f32 %v732_v37, %v664_v38 }
 0x6a2   :  { %v758_v39 = vpop.eup %757  ;;  %671 = vst.msk [vmem:[#allocation2] sm:$0xff] %vm58_vm0, %v669_v40 }
 0x6a3   :  { %v650_v33 = vmul.f32 %v758_v39, %v638_v35  ;;  %vm656_vm13 = vweird.f32 %v758_v39 }
 0x6a4   :  { %vm657_vm15 = vmor %vm655_vm14, %vm656_vm13 }
 0x6a5   :  { %v651_v41 = vmul.f32 %v758_v39, %v650_v33 }
 0x6a7   :  { %v652_v42 = vmul.f32 0.5, %v651_v41 }
 0x6a9   :  { %v653_v43 = vsub.f32 1.5, %v652_v42 }
 0x6ab   :  { %v654_v44 = vmul.f32 %v758_v39, %v653_v43 }
 0x6ad   :  { %v658_v45 = vsel %vm657_vm15, %v758_v39, %v654_v44 }
 0x6ae   :  { %v660_v46 = vmul.f32 %v658_v45, %v626_v20 }
 0x6b0   :  { %v665_v47 = vmul.f32 %v731_v34, %v660_v46 }
 0x6b2   :  { %v670_v48 = vadd.f32 %v732_v37, %v665_v47 }
 0x6b4   :  { %672 = vst.msk [vmem:[#allocation2 + $0x8] sm:$0xff] %vm58_vm0, %v670_v48 }
 0x6b5   :  { %685 = dma.vmem_to_hbm [thread:$0]  %s678_s19, 256, %s680_s13, [#allocation3], %s793_s21, %s793_s21, %s794_s22  }
 0x6b6   :  { %783 = dma.done.wait [#allocation3], 256  }
 0x6b7   :  { %784 = vsyncadd [#allocation3], 4294967040 }
 0x6b8   :  { %690 = vsyncpa [#allocation3], 1 }

</bundles_post_ra>
